<compile_context>
chip_gen: v6e
topology: v6e:2x2x1
jax: 0.10.0
libtpu: 0.0.40
codegen_flags: <defaults>
</compile_context>

<pallas_src>
import functools

import jax
import jax.numpy as jnp
from jax.experimental import pallas as pl
from jax.experimental.pallas import tpu as pltpu

_BN_EPS = 1e-5


def mlp_head_kernel(x_ref, w1_ref, gamma_ref, beta_ref, w2_ref, b2_ref,
                    o_ref, acc_ref):
    c = pl.program_id(0)          # core-parallel partial index
    k = pl.program_id(1)          # hidden-tile reduction index (within partial)
    nk = pl.num_programs(1)

    @pl.when(k == 0)
    def _():
        # Fold b2 into the accumulator init of partial 0 only; other partials
        # start from zero and the wrapper sums them.
        bias = jnp.where(c == 0, b2_ref[...].astype(jnp.float32), 0.0)
        acc_ref[...] = jnp.broadcast_to(bias, acc_ref.shape)

    # ---- Linear 1 (hidden tile): bf16 MXU operands, f32 accumulation ----
    # b1 is intentionally omitted: training-mode BN's mean subtraction cancels
    # any per-column constant added before it.
    h = jnp.dot(x_ref[...], w1_ref[...], preferred_element_type=jnp.float32)

    # ---- BatchNorm1d (training mode, biased batch stats), two-pass ----
    # Per-column stats are independent across hidden tiles, so tiling is exact.
    inv_b = jnp.float32(1.0 / h.shape[0])
    mean = jnp.sum(h, axis=0, keepdims=True) * inv_b
    centered = h - mean
    var = jnp.sum(centered * centered, axis=0, keepdims=True) * inv_b
    scale = gamma_ref[...].astype(jnp.float32) * jax.lax.rsqrt(var + _BN_EPS)
    shift = beta_ref[...].astype(jnp.float32)

    # ---- fused BN affine + ReLU ----
    h = jnp.maximum(centered * scale + shift, 0.0)

    # ---- Linear 2 partial product (bf16 MXU operands, f32 accumulate) ----
    acc_ref[...] += jnp.dot(h.astype(w2_ref.dtype), w2_ref[...],
                            preferred_element_type=jnp.float32)

    @pl.when(k == nk - 1)
    def _():
        # Single lane-dense store of this partial's (B, out_dim) result.
        o_ref[0] = acc_ref[...].astype(o_ref.dtype)


def _vmem_capacity_bytes():
    """Physical VMEM per TensorCore; conservative 64 MiB (v7x) fallback."""
    try:
        info = pltpu.get_tpu_info()
        cap = getattr(info, "vmem_capacity_bytes", None)
        if cap:
            return int(cap)
    except Exception:
        pass
    return 64 * 1024 * 1024


def _vmem_need_bytes(batch, in_dim, tk, out_dim, bpe):
    """Approximate per-core VMEM footprint for a given hidden tile size."""
    return (2 * batch * in_dim * bpe          # x (2 pipeline buffers)
            + 2 * in_dim * tk * bpe           # W1 tile, double-buffered
            + 2 * tk * out_dim * bpe          # W2 tile, double-buffered
            + 2 * 2 * 8 * tk * 4              # gamma/beta tiles (sublane-padded)
            + 2 * 8 * out_dim * 4             # b2
            + batch * out_dim * 4             # f32 accumulator scratch
            + 2 * batch * out_dim * 4         # output (f32 partial) buffers
            + 2 * batch * tk * 4)             # (B, tk) f32 h intermediate + slack


def _pick_hidden_tile(hidden_dim, batch, in_dim, out_dim, bpe, budget, tk=None):
    if tk is not None:
        assert hidden_dim % tk == 0, (hidden_dim, tk)
        return tk
    # Big tiles first: v6e/v7x MXUs are 2x256^2 and fewer grid steps amortize
    # the ~0.35 us/step pipeline overhead.  128 only as a last aligned resort.
    for cand in (512, 256, 128):
        if (hidden_dim % cand == 0
                and _vmem_need_bytes(batch, in_dim, cand, out_dim, bpe) <= budget):
            return cand
    return hidden_dim   # small / unaligned hidden: single full-width tile


@functools.partial(jax.jit, static_argnames=("tk", "mxu_dtype"))
def mlp_head(x, w1, b1, gamma, beta, w2, b2, *, tk=None, mxu_dtype=jnp.bfloat16):
    """Fused Linear -> BatchNorm1d(train) -> ReLU -> Linear.

    b1 is accepted for API parity with the PyTorch module but is a mathematical
    no-op under training-mode BatchNorm, so it is not fed to the kernel.
    """
    del b1
    B, in_dim = x.shape
    hidden_dim = w1.shape[1]
    out_dim = w2.shape[1]
    out_dtype = x.dtype

    bpe = jnp.dtype(mxu_dtype).itemsize
    cap = _vmem_capacity_bytes()
    tk = _pick_hidden_tile(hidden_dim, B, in_dim, out_dim, bpe,
                           budget=int(0.75 * cap), tk=tk)
    nk_total = hidden_dim // tk
    nc = 2 if (nk_total >= 2 and nk_total % 2 == 0) else 1   # v7x: 2 TCs
    nk_per = nk_total // nc

    # Scoped-VMEM limit derived from the actual footprint, capped below physical.
    need = _vmem_need_bytes(B, in_dim, tk, out_dim, bpe)
    vmem_limit = int(min(max(int(1.5 * need) + (8 << 20), 32 << 20),
                         int(0.9 * cap)))

    # bf16 MXU operands (weight-streaming bound at small B: halves HBM bytes
    # and uses the native bf16 MXU path); BN math & accumulators stay f32.
    x_m = x.astype(mxu_dtype)
    w1_m = w1.astype(mxu_dtype)
    w2_m = w2.astype(mxu_dtype)

    gamma = gamma.reshape(1, hidden_dim)
    beta = beta.reshape(1, hidden_dim)
    b2 = b2.reshape(1, out_dim).astype(jnp.float32)

    partials = pl.pallas_call(
        mlp_head_kernel,
        out_shape=jax.ShapeDtypeStruct((nc, B, out_dim), jnp.float32),
        grid_spec=pltpu.PrefetchScalarGridSpec(
            num_scalar_prefetch=0,
            grid=(nc, nk_per),   # (core-parallel partials, hidden reduction)
            in_specs=[
                pl.BlockSpec((B, in_dim), lambda c, k: (0, 0)),              # x (resident)
                pl.BlockSpec((in_dim, tk),
                             lambda c, k: (0, c * nk_per + k)),              # W1 tile
                pl.BlockSpec((1, tk), lambda c, k: (0, c * nk_per + k)),     # gamma tile
                pl.BlockSpec((1, tk), lambda c, k: (0, c * nk_per + k)),     # beta tile
                pl.BlockSpec((tk, out_dim),
                             lambda c, k: (c * nk_per + k, 0)),              # W2 tile
                pl.BlockSpec((1, out_dim), lambda c, k: (0, 0)),             # b2
            ],
            out_specs=pl.BlockSpec((1, B, out_dim), lambda c, k: (c, 0, 0)),
            scratch_shapes=[pltpu.VMEM((B, out_dim), jnp.float32)],
        ),
        compiler_params=pltpu.CompilerParams(
            dimension_semantics=("parallel", "arbitrary"),
            vmem_limit_bytes=vmem_limit,
        ),
    )(x_m, w1_m, gamma, beta, w2_m, b2)

    # Cross-core reduction of the partials (no-op sum when nc == 1).
    return jnp.sum(partials, axis=0).astype(out_dtype)


def reference(x, w1, b1, gamma, beta, w2, b2, mxu_dtype=jnp.bfloat16):
    """Plain-JAX reference matching PyTorch MLPHead forward (BN in train mode),
    mirroring the kernel's bf16 quantization points on the MXU operands."""
    xf = x.astype(mxu_dtype).astype(jnp.float32)
    w1f = w1.astype(mxu_dtype).astype(jnp.float32)
    w2f = w2.astype(mxu_dtype).astype(jnp.float32)

    h = xf @ w1f + b1.reshape(1, -1)
    mean = jnp.mean(h, axis=0, keepdims=True)
    var = jnp.mean((h - mean) ** 2, axis=0, keepdims=True)
    h = (h - mean) * jax.lax.rsqrt(var + _BN_EPS)
    h = h * gamma.reshape(1, -1) + beta.reshape(1, -1)
    h = jnp.maximum(h, 0.0)
    h = h.astype(mxu_dtype).astype(jnp.float32)
    return (h @ w2f + b2.reshape(1, -1)).astype(x.dtype)


if __name__ == "__main__":
    # Module defaults (in_dim=512, hidden_dim=1024, out_dim=256) at a small batch.
    B, in_dim, hidden_dim, out_dim = 64, 512, 1024, 256

    key = jax.random.PRNGKey(0)
    kx, kw1, kb1, kw2, kb2 = jax.random.split(key, 5)

    x = jax.random.normal(kx, (B, in_dim), dtype=jnp.float32)

    # Deterministic synthetic params (PyTorch-like uniform fan-in scaling).
    lim1 = 1.0 / (in_dim ** 0.5)
    w1 = jax.random.uniform(kw1, (in_dim, hidden_dim), jnp.float32, -lim1, lim1)
    b1 = jax.random.uniform(kb1, (hidden_dim,), jnp.float32, -lim1, lim1)

    gamma = jnp.ones((hidden_dim,), jnp.float32)   # BN weight
    beta = jnp.zeros((hidden_dim,), jnp.float32)   # BN bias

    lim2 = 1.0 / (hidden_dim ** 0.5)
    w2 = jax.random.uniform(kw2, (hidden_dim, out_dim), jnp.float32, -lim2, lim2)
    b2 = jax.random.uniform(kb2, (out_dim,), jnp.float32, -lim2, lim2)

    out = mlp_head(x, w1, b1, gamma, beta, w2, b2)
    out = jax.block_until_ready(out)

    ref = reference(x, w1, b1, gamma, beta, w2, b2)
    assert out.shape == (B, out_dim), out.shape
    err = float(jnp.max(jnp.abs(out - ref)))
    # bf16 MXU operands => slightly looser tolerance than pure-f32.
    assert err < 2e-3, err

    print("KERNEL_OK")
</pallas_src>

<mosaic_0001>
module attributes {stable_mosaic.version = 11 : i64} {
  func.func @mlp_head_kernel(%arg0: i32, %arg1: i32, %arg2: memref<64x512xbf16, #tpu.memory_space<vmem>>, %arg3: memref<512x512xbf16, #tpu.memory_space<vmem>>, %arg4: memref<1x512xf32, #tpu.memory_space<vmem>>, %arg5: memref<1x512xf32, #tpu.memory_space<vmem>>, %arg6: memref<512x256xbf16, #tpu.memory_space<vmem>>, %arg7: memref<1x256xf32, #tpu.memory_space<vmem>>, %arg8: memref<1x64x256xf32, #tpu.memory_space<vmem>>, %arg9: memref<64x256xf32, #tpu.memory_space<vmem>>) attributes {dimension_semantics = [#tpu.dimension_semantics<parallel>, #tpu.dimension_semantics<arbitrary>], iteration_bounds = array<i64: 2, 1>, scalar_prefetch = 0 : i64, scratch_operands = 1 : i64, tpu.core_type = #tpu.core_type<tc>, window_params = [{pipeline_mode = #tpu.pipeline_mode<synchronous>, transform_indices = @transform_0, window_bounds = array<i64: 64, 512>}, {transform_indices = @transform_1, window_bounds = array<i64: 512, 512>}, {transform_indices = @transform_2, window_bounds = array<i64: 1, 512>}, {transform_indices = @transform_3, window_bounds = array<i64: 1, 512>}, {transform_indices = @transform_4, window_bounds = array<i64: 512, 256>}, {pipeline_mode = #tpu.pipeline_mode<synchronous>, transform_indices = @transform_5, window_bounds = array<i64: 1, 256>}, {transform_indices = @transform_6, window_bounds = array<i64: 1, 64, 256>}]} {
    %c0_i32 = arith.constant 0 : i32
    %0 = arith.cmpi eq, %arg1, %c0_i32 : i32
    %1 = arith.extui %0 : i1 to i32
    %c0_i32_0 = arith.constant 0 : i32
    %2 = arith.cmpi ne, %1, %c0_i32_0 : i32
    scf.if %2 {
      %c0_i32_23 = arith.constant 0 : i32
      %38 = arith.cmpi eq, %arg0, %c0_i32_23 : i32
      %c0_24 = arith.constant 0 : index
      %c0_25 = arith.constant 0 : index
      %39 = vector.load %arg7[%c0_24, %c0_25] : memref<1x256xf32, #tpu.memory_space<vmem>>, vector<1x256xf32>
      %cst_26 = arith.constant 0.000000e+00 : f32
      %40 = vector.broadcast %cst_26 : f32 to vector<1x256xf32>
      %41 = arith.select %38, %39, %40 : vector<1x256xf32>
      %42 = vector.shape_cast %41 : vector<1x256xf32> to vector<1x256xf32>
      %43 = vector.broadcast %42 : vector<1x256xf32> to vector<64x256xf32>
      %c0_27 = arith.constant 0 : index
      %c0_28 = arith.constant 0 : index
      %44 = vector.load %arg9[%c0_27, %c0_28] : memref<64x256xf32, #tpu.memory_space<vmem>>, vector<64x256xf32>
      tpu.vector_store %arg9[%c0_27, %c0_28], %43 {strides = array<i32>} : memref<64x256xf32, #tpu.memory_space<vmem>>, vector<64x256xf32>,
    } else {
    }
    %c0 = arith.constant 0 : index
    %c0_1 = arith.constant 0 : index
    %3 = vector.load %arg2[%c0, %c0_1] : memref<64x512xbf16, #tpu.memory_space<vmem>>, vector<64x512xbf16>
    %c0_2 = arith.constant 0 : index
    %c0_3 = arith.constant 0 : index
    %4 = vector.load %arg3[%c0_2, %c0_3] : memref<512x512xbf16, #tpu.memory_space<vmem>>, vector<512x512xbf16>
    %cst = arith.constant dense<0.000000e+00> : vector<64x512xf32>
    %5 = tpu.matmul %3, %4, %cst {dimension_numbers = #tpu.dot_dimension_numbers<[1], [0], [0], [1], [0, 0, 1, 1], [], []>} : vector<64x512xbf16>, vector<512x512xbf16>, vector<64x512xf32> -> vector<64x512xf32>
    %cst_4 = arith.constant dense<0.000000e+00> : vector<512xf32>
    %6 = vector.multi_reduction <add>, %5, %cst_4 [0] : vector<64x512xf32> to vector<512xf32>
    %7 = vector.shape_cast %6 : vector<512xf32> to vector<1x512xf32>
    %cst_5 = arith.constant 1.562500e-02 : f32
    %8 = vector.broadcast %cst_5 : f32 to vector<1x512xf32>
    %9 = arith.mulf %7, %8 : vector<1x512xf32>
    %10 = vector.broadcast %9 : vector<1x512xf32> to vector<64x512xf32>
    %11 = arith.subf %5, %10 : vector<64x512xf32>
    %12 = arith.mulf %11, %11 : vector<64x512xf32>
    %cst_6 = arith.constant dense<0.000000e+00> : vector<512xf32>
    %13 = vector.multi_reduction <add>, %12, %cst_6 [0] : vector<64x512xf32> to vector<512xf32>
    %14 = vector.shape_cast %13 : vector<512xf32> to vector<1x512xf32>
    %cst_7 = arith.constant 1.562500e-02 : f32
    %15 = vector.broadcast %cst_7 : f32 to vector<1x512xf32>
    %16 = arith.mulf %14, %15 : vector<1x512xf32>
    %c0_8 = arith.constant 0 : index
    %c0_9 = arith.constant 0 : index
    %17 = vector.load %arg4[%c0_8, %c0_9] : memref<1x512xf32, #tpu.memory_space<vmem>>, vector<1x512xf32>
    %cst_10 = arith.constant 9.99999974E-6 : f32
    %18 = vector.broadcast %cst_10 : f32 to vector<1x512xf32>
    %19 = arith.addf %16, %18 : vector<1x512xf32>
    %20 = math.rsqrt %19 : vector<1x512xf32>
    %21 = arith.mulf %17, %20 : vector<1x512xf32>
    %c0_11 = arith.constant 0 : index
    %c0_12 = arith.constant 0 : index
    %22 = vector.load %arg5[%c0_11, %c0_12] : memref<1x512xf32, #tpu.memory_space<vmem>>, vector<1x512xf32>
    %23 = vector.broadcast %21 : vector<1x512xf32> to vector<64x512xf32>
    %24 = arith.mulf %11, %23 : vector<64x512xf32>
    %25 = vector.broadcast %22 : vector<1x512xf32> to vector<64x512xf32>
    %26 = arith.addf %24, %25 : vector<64x512xf32>
    %cst_13 = arith.constant 0.000000e+00 : f32
    %27 = vector.broadcast %cst_13 : f32 to vector<64x512xf32>
    %28 = arith.maximumf %26, %27 : vector<64x512xf32>
    %c0_14 = arith.constant 0 : index
    %c0_15 = arith.constant 0 : index
    %29 = vector.load %arg9[%c0_14, %c0_15] : memref<64x256xf32, #tpu.memory_space<vmem>>, vector<64x256xf32>
    %30 = arith.truncf %28 : vector<64x512xf32> to vector<64x512xbf16>
    %c0_16 = arith.constant 0 : index
    %c0_17 = arith.constant 0 : index
    %31 = vector.load %arg6[%c0_16, %c0_17] : memref<512x256xbf16, #tpu.memory_space<vmem>>, vector<512x256xbf16>
    %cst_18 = arith.constant dense<0.000000e+00> : vector<64x256xf32>
    %32 = tpu.matmul %30, %31, %cst_18 {dimension_numbers = #tpu.dot_dimension_numbers<[1], [0], [0], [1], [0, 0, 1, 1], [], []>} : vector<64x512xbf16>, vector<512x256xbf16>, vector<64x256xf32> -> vector<64x256xf32>
    %33 = arith.addf %29, %32 : vector<64x256xf32>
    %c0_19 = arith.constant 0 : index
    %c0_20 = arith.constant 0 : index
    %34 = vector.load %arg9[%c0_19, %c0_20] : memref<64x256xf32, #tpu.memory_space<vmem>>, vector<64x256xf32>
    tpu.vector_store %arg9[%c0_19, %c0_20], %33 {strides = array<i32>} : memref<64x256xf32, #tpu.memory_space<vmem>>, vector<64x256xf32>,
    %c0_i32_21 = arith.constant 0 : i32
    %35 = arith.cmpi eq, %arg1, %c0_i32_21 : i32
    %36 = arith.extui %35 : i1 to i32
    %c0_i32_22 = arith.constant 0 : i32
    %37 = arith.cmpi ne, %36, %c0_i32_22 : i32
    scf.if %37 {
      %c0_23 = arith.constant 0 : index
      %c0_24 = arith.constant 0 : index
      %38 = vector.load %arg9[%c0_23, %c0_24] : memref<64x256xf32, #tpu.memory_space<vmem>>, vector<64x256xf32>
      %c0_25 = arith.constant 0 : index
      %c0_26 = arith.constant 0 : index
      %c0_27 = arith.constant 0 : index
      %39 = vector.load %arg8[%c0_25, %c0_26, %c0_27] : memref<1x64x256xf32, #tpu.memory_space<vmem>>, vector<1x64x256xf32>
      %40 = vector.shape_cast %39 : vector<1x64x256xf32> to vector<64x256xf32>
      %41 = vector.shape_cast %38 : vector<64x256xf32> to vector<1x64x256xf32>
      tpu.vector_store %arg8[%c0_25, %c0_26, %c0_27], %41 {strides = array<i32>} : memref<1x64x256xf32, #tpu.memory_space<vmem>>, vector<1x64x256xf32>,
    } else {
    }
    return
  }
  func.func @transform_0(%arg0: i32, %arg1: i32) -> (i32, i32) {
    %c0_i32 = arith.constant 0 : i32
    %c0_i32_0 = arith.constant 0 : i32
    %c0_i32_1 = arith.constant 0 : i32
    return %c0_i32, %c0_i32_0 : i32, i32
  }
  func.func @transform_1(%arg0: i32, %arg1: i32) -> (i32, i32) {
    %c1_i32 = arith.constant 1 : i32
    %0 = arith.muli %arg0, %c1_i32 : i32
    %1 = arith.addi %0, %arg1 : i32
    %c0_i32 = arith.constant 0 : i32
    %c0_i32_0 = arith.constant 0 : i32
    return %c0_i32, %1 : i32, i32
  }
  func.func @transform_2(%arg0: i32, %arg1: i32) -> (i32, i32) {
    %c1_i32 = arith.constant 1 : i32
    %0 = arith.muli %arg0, %c1_i32 : i32
    %1 = arith.addi %0, %arg1 : i32
    %c0_i32 = arith.constant 0 : i32
    %c0_i32_0 = arith.constant 0 : i32
    return %c0_i32, %1 : i32, i32
  }
  func.func @transform_3(%arg0: i32, %arg1: i32) -> (i32, i32) {
    %c1_i32 = arith.constant 1 : i32
    %0 = arith.muli %arg0, %c1_i32 : i32
    %1 = arith.addi %0, %arg1 : i32
    %c0_i32 = arith.constant 0 : i32
    %c0_i32_0 = arith.constant 0 : i32
    return %c0_i32, %1 : i32, i32
  }
  func.func @transform_4(%arg0: i32, %arg1: i32) -> (i32, i32) {
    %c1_i32 = arith.constant 1 : i32
    %0 = arith.muli %arg0, %c1_i32 : i32
    %1 = arith.addi %0, %arg1 : i32
    %c0_i32 = arith.constant 0 : i32
    %c0_i32_0 = arith.constant 0 : i32
    return %1, %c0_i32 : i32, i32
  }
  func.func @transform_5(%arg0: i32, %arg1: i32) -> (i32, i32) {
    %c0_i32 = arith.constant 0 : i32
    %c0_i32_0 = arith.constant 0 : i32
    %c0_i32_1 = arith.constant 0 : i32
    return %c0_i32, %c0_i32_0 : i32, i32
  }
  func.func @transform_6(%arg0: i32, %arg1: i32) -> (i32, i32, i32) {
    %c0_i32 = arith.constant 0 : i32
    %c0_i32_0 = arith.constant 0 : i32
    %c0_i32_1 = arith.constant 0 : i32
    return %arg0, %c0_i32, %c0_i32_0 : i32, i32, i32
  }
}

</mosaic_0001>

<bundles_post_ra>
// kernel: mlp_head.1
= control target key start
LH: loop header
LB: loop body
LE: loop exit
PB: predicated region body
PF: predicated region fallthrough
CT: control target
= control target key end

     0   :  { %s3569_s21 = smov 0   ;;  %s3571_s22 = smov 0   ;;  %s4711_s0 = inlined_call_operand.vmem [shape: bf16[64,512], index: 0, kind: input, shape index: {}]   ;;  %s4712_s1 = inlined_call_operand.vmem [shape: bf16[512,1024], index: 1, kind: input, shape index: {}]   ;;  %s4713_s2 = inlined_call_operand.vmem [shape: f32[1,1024], index: 2, kind: input, shape index: {}]   ;;  %s4714_s3 = inlined_call_operand.vmem [shape: f32[1,1024], index: 3, kind: input, shape index: {}]   ;;  %s4715_s4 = inlined_call_operand.vmem [shape: bf16[1024,256], index: 4, kind: input, shape index: {}]   ;;  %s4716_s5 = inlined_call_operand.vmem [shape: f32[1,256], index: 5, kind: input, shape index: {}]   ;;  %s4717_s6 = inlined_call_operand.vmem [shape: f32[2,64,256], index: 6, kind: output, shape index: {}]  }
   0x1   :  { %s3573_s23 = smov 0   ;;  %s3575_s24 = smov 0  }
   0x2   :  { %s3577_s25 = smov 0  }
   0x3 LB: > { %s28_s26 = sadd.s32 1, %s3527_s24  ;;  %p65_p1 = scmp.ne.s32.totalorder %s3519_s22, %s3515_s21  ;;  %s3531_s25 = sphi %s3577_s25, %s16_s25   ;;  %s3527_s24 = sphi %s3575_s24, %s4721_s24   ;;  %s3523_s23 = sphi %s3573_s23, %s4720_s23   ;;  %s3519_s22 = sphi %s3571_s22, %s4719_s22   ;;  %s3515_s21 = sphi %s3569_s21, %s4718_s21  }
   0x4   : > { %p30_p0 = scmp.ge.s32.totalorder %s28_s26, 2  ;;  %p66_p2 = scmp.eq.s32.totalorder %s3531_s25, 0 }
   0x5   : > { %s58_s28 = sadd.s32 1, %s3519_s22  ;;  %p2906_p5 = scmp.ge.s32.totalorder %s3531_s25, 2 }
   0x6   : > { %s4723_s26 = smov (%p30_p0, %s28_s26), 0  ;;  %p67_p3 = por %p66_p2, %p65_p1 }
   0x7   : > { %s55_s27 = ssub.s32 %s3527_s24, %s4723_s26  ;;  %228 = sbr.rel (%p2906_p5) target bundleno = 80 (0x50), region = 24 }
   0x8   : > { %p56_p4 = scmp.eq.s32.totalorder %s55_s27, 0 }
   0xa   : > { %s3604_s29 = scalar_select %p56_p4, %s3519_s22, %s58_s28  }
   0xc   : > { %231 = sbr.rel (!%p67_p3) target bundleno = 80 (0x50), region = 28  ;;  %s233_s30 = sand.u32 (%p67_p3), 1, %s3519_s22  }
   0xd   : > { %s3129_s7 = sshll.u32 (%p67_p3), %s3527_s24, 4  ;;  %s2907_s8 = sshll.u32 (%p67_p3), %s233_s30, 10 }
   0xe   : > { %s3612_s11 = scalar_lea.vmem (%p67_p3), %s4712_s1, %s3129_s7  ;;  %s3617_s12 = scalar_lea.vmem (%p67_p3), [#allocation3], %s2907_s8 }
   0xf   : > { %v252_v0 = vld [vmem:[%s3612_s11] sm:$0xff] (%p67_p3)  ;;  %v254_v1 = vld [vmem:[%s3612_s11 + $0x8] sm:$0xff] (%p67_p3) }
  0x10   : > { %v256_v2 = vld [vmem:[%s3612_s11 + $0x20] sm:$0xff] (%p67_p3)  ;;  %253 = vst [vmem:[%s3617_s12] sm:$0xff] (%p67_p3), %v252_v0  ;;  %255 = vst [vmem:[%s3617_s12 + $0x8] sm:$0xff] (%p67_p3), %v254_v1  ;;  %v258_v3 = vld [vmem:[%s3612_s11 + $0x28] sm:$0xff] (%p67_p3) }
  0x11   : > { %257 = vst [vmem:[%s3617_s12 + $0x10] sm:$0xff] %v256_v2  ;;  %v260_v4 = vld [vmem:[%s3612_s11 + $0x40] sm:$0xff]  ;;  %v262_v5 = vld [vmem:[%s3612_s11 + $0x48] sm:$0xff]  ;;  %259 = vst [vmem:[%s3617_s12 + $0x18] sm:$0xff] %v258_v3 }
  0x12   : > { %261 = vst [vmem:[%s3617_s12 + $0x20] sm:$0xff] %v260_v4  ;;  %263 = vst [vmem:[%s3617_s12 + $0x28] sm:$0xff] %v262_v5  ;;  %v264_v6 = vld [vmem:[%s3612_s11 + $0x60] sm:$0xff]  ;;  %v266_v7 = vld [vmem:[%s3612_s11 + $0x68] sm:$0xff] }
  0x13   : > { %v268_v8 = vld [vmem:[%s3612_s11 + $0x80] sm:$0xff]  ;;  %265 = vst [vmem:[%s3617_s12 + $0x30] sm:$0xff] %v264_v6  ;;  %267 = vst [vmem:[%s3617_s12 + $0x38] sm:$0xff] %v266_v7  ;;  %v270_v9 = vld [vmem:[%s3612_s11 + $0x88] sm:$0xff] }
  0x14   : > { %269 = vst [vmem:[%s3617_s12 + $0x40] sm:$0xff] %v268_v8  ;;  %v272_v10 = vld [vmem:[%s3612_s11 + $0xa0] sm:$0xff]  ;;  %v274_v11 = vld [vmem:[%s3612_s11 + $0xa8] sm:$0xff]  ;;  %271 = vst [vmem:[%s3617_s12 + $0x48] sm:$0xff] %v270_v9 }
  0x15   : > { %273 = vst [vmem:[%s3617_s12 + $0x50] sm:$0xff] %v272_v10  ;;  %275 = vst [vmem:[%s3617_s12 + $0x58] sm:$0xff] %v274_v11  ;;  %v276_v12 = vld [vmem:[%s3612_s11 + $0xc0] sm:$0xff]  ;;  %v278_v13 = vld [vmem:[%s3612_s11 + $0xc8] sm:$0xff] }
  0x16   : > { %v280_v14 = vld [vmem:[%s3612_s11 + $0xe0] sm:$0xff]  ;;  %277 = vst [vmem:[%s3617_s12 + $0x60] sm:$0xff] %v276_v12  ;;  %279 = vst [vmem:[%s3617_s12 + $0x68] sm:$0xff] %v278_v13  ;;  %v282_v15 = vld [vmem:[%s3612_s11 + $0xe8] sm:$0xff] }
  0x17   : > { %281 = vst [vmem:[%s3617_s12 + $0x70] sm:$0xff] %v280_v14  ;;  %v284_v16 = vld [vmem:[%s3612_s11 + $0x100] sm:$0xff]  ;;  %v286_v17 = vld [vmem:[%s3612_s11 + $0x108] sm:$0xff]  ;;  %283 = vst [vmem:[%s3617_s12 + $0x78] sm:$0xff] %v282_v15 }
  0x18   : > { %285 = vst [vmem:[%s3617_s12 + $0x80] sm:$0xff] %v284_v16  ;;  %287 = vst [vmem:[%s3617_s12 + $0x88] sm:$0xff] %v286_v17  ;;  %v288_v18 = vld [vmem:[%s3612_s11 + $0x120] sm:$0xff]  ;;  %v290_v19 = vld [vmem:[%s3612_s11 + $0x128] sm:$0xff] }
  0x19   : > { %v292_v20 = vld [vmem:[%s3612_s11 + $0x140] sm:$0xff]  ;;  %289 = vst [vmem:[%s3617_s12 + $0x90] sm:$0xff] %v288_v18  ;;  %291 = vst [vmem:[%s3617_s12 + $0x98] sm:$0xff] %v290_v19  ;;  %v294_v21 = vld [vmem:[%s3612_s11 + $0x148] sm:$0xff] }
  0x1a   : > { %293 = vst [vmem:[%s3617_s12 + $0xa0] sm:$0xff] %v292_v20  ;;  %v296_v22 = vld [vmem:[%s3612_s11 + $0x160] sm:$0xff]  ;;  %v298_v23 = vld [vmem:[%s3612_s11 + $0x168] sm:$0xff]  ;;  %295 = vst [vmem:[%s3617_s12 + $0xa8] sm:$0xff] %v294_v21 }
  0x1b   : > { %297 = vst [vmem:[%s3617_s12 + $0xb0] sm:$0xff] %v296_v22  ;;  %299 = vst [vmem:[%s3617_s12 + $0xb8] sm:$0xff] %v298_v23  ;;  %v300_v24 = vld [vmem:[%s3612_s11 + $0x180] sm:$0xff]  ;;  %v302_v25 = vld [vmem:[%s3612_s11 + $0x188] sm:$0xff] }
  0x1c   : > { %v304_v26 = vld [vmem:[%s3612_s11 + $0x1a0] sm:$0xff]  ;;  %301 = vst [vmem:[%s3617_s12 + $0xc0] sm:$0xff] %v300_v24  ;;  %303 = vst [vmem:[%s3617_s12 + $0xc8] sm:$0xff] %v302_v25  ;;  %v306_v27 = vld [vmem:[%s3612_s11 + $0x1a8] sm:$0xff] }
  0x1d   : > { %305 = vst [vmem:[%s3617_s12 + $0xd0] sm:$0xff] %v304_v26  ;;  %v308_v28 = vld [vmem:[%s3612_s11 + $0x1c0] sm:$0xff]  ;;  %v310_v29 = vld [vmem:[%s3612_s11 + $0x1c8] sm:$0xff]  ;;  %307 = vst [vmem:[%s3617_s12 + $0xd8] sm:$0xff] %v306_v27 }
  0x1e   : > { %309 = vst [vmem:[%s3617_s12 + $0xe0] sm:$0xff] %v308_v28  ;;  %311 = vst [vmem:[%s3617_s12 + $0xe8] sm:$0xff] %v310_v29  ;;  %v312_v30 = vld [vmem:[%s3612_s11 + $0x1e0] sm:$0xff]  ;;  %v314_v31 = vld [vmem:[%s3612_s11 + $0x1e8] sm:$0xff] }
  0x1f   : > { %v316_v32 = vld [vmem:[%s3612_s11 + $0x200] sm:$0xff]  ;;  %313 = vst [vmem:[%s3617_s12 + $0xf0] sm:$0xff] %v312_v30  ;;  %315 = vst [vmem:[%s3617_s12 + $0xf8] sm:$0xff] %v314_v31  ;;  %v318_v33 = vld [vmem:[%s3612_s11 + $0x208] sm:$0xff] }
  0x20   : > { %317 = vst [vmem:[%s3617_s12 + $0x100] sm:$0xff] %v316_v32  ;;  %v320_v34 = vld [vmem:[%s3612_s11 + $0x220] sm:$0xff]  ;;  %v322_v35 = vld [vmem:[%s3612_s11 + $0x228] sm:$0xff]  ;;  %319 = vst [vmem:[%s3617_s12 + $0x108] sm:$0xff] %v318_v33 }
  0x21   : > { %321 = vst [vmem:[%s3617_s12 + $0x110] sm:$0xff] %v320_v34  ;;  %323 = vst [vmem:[%s3617_s12 + $0x118] sm:$0xff] %v322_v35  ;;  %v324_v36 = vld [vmem:[%s3612_s11 + $0x240] sm:$0xff]  ;;  %v326_v37 = vld [vmem:[%s3612_s11 + $0x248] sm:$0xff] }
  0x22   : > { %v328_v38 = vld [vmem:[%s3612_s11 + $0x260] sm:$0xff]  ;;  %325 = vst [vmem:[%s3617_s12 + $0x120] sm:$0xff] %v324_v36  ;;  %327 = vst [vmem:[%s3617_s12 + $0x128] sm:$0xff] %v326_v37  ;;  %v330_v39 = vld [vmem:[%s3612_s11 + $0x268] sm:$0xff] }
  0x23   : > { %329 = vst [vmem:[%s3617_s12 + $0x130] sm:$0xff] %v328_v38  ;;  %v332_v40 = vld [vmem:[%s3612_s11 + $0x280] sm:$0xff]  ;;  %v334_v41 = vld [vmem:[%s3612_s11 + $0x288] sm:$0xff]  ;;  %331 = vst [vmem:[%s3617_s12 + $0x138] sm:$0xff] %v330_v39 }
  0x24   : > { %333 = vst [vmem:[%s3617_s12 + $0x140] sm:$0xff] %v332_v40  ;;  %335 = vst [vmem:[%s3617_s12 + $0x148] sm:$0xff] %v334_v41  ;;  %v336_v42 = vld [vmem:[%s3612_s11 + $0x2a0] sm:$0xff]  ;;  %v338_v43 = vld [vmem:[%s3612_s11 + $0x2a8] sm:$0xff] }
  0x25   : > { %v340_v44 = vld [vmem:[%s3612_s11 + $0x2c0] sm:$0xff]  ;;  %337 = vst [vmem:[%s3617_s12 + $0x150] sm:$0xff] %v336_v42  ;;  %339 = vst [vmem:[%s3617_s12 + $0x158] sm:$0xff] %v338_v43  ;;  %v342_v45 = vld [vmem:[%s3612_s11 + $0x2c8] sm:$0xff] }
  0x26   : > { %341 = vst [vmem:[%s3617_s12 + $0x160] sm:$0xff] %v340_v44  ;;  %v344_v46 = vld [vmem:[%s3612_s11 + $0x2e0] sm:$0xff]  ;;  %v346_v47 = vld [vmem:[%s3612_s11 + $0x2e8] sm:$0xff]  ;;  %343 = vst [vmem:[%s3617_s12 + $0x168] sm:$0xff] %v342_v45 }
  0x27   : > { %345 = vst [vmem:[%s3617_s12 + $0x170] sm:$0xff] %v344_v46  ;;  %347 = vst [vmem:[%s3617_s12 + $0x178] sm:$0xff] %v346_v47  ;;  %v348_v48 = vld [vmem:[%s3612_s11 + $0x300] sm:$0xff]  ;;  %v350_v49 = vld [vmem:[%s3612_s11 + $0x308] sm:$0xff] }
  0x28   : > { %v352_v50 = vld [vmem:[%s3612_s11 + $0x320] sm:$0xff]  ;;  %349 = vst [vmem:[%s3617_s12 + $0x180] sm:$0xff] %v348_v48  ;;  %351 = vst [vmem:[%s3617_s12 + $0x188] sm:$0xff] %v350_v49  ;;  %v354_v51 = vld [vmem:[%s3612_s11 + $0x328] sm:$0xff] }
  0x29   : > { %353 = vst [vmem:[%s3617_s12 + $0x190] sm:$0xff] %v352_v50  ;;  %v356_v52 = vld [vmem:[%s3612_s11 + $0x340] sm:$0xff]  ;;  %v358_v53 = vld [vmem:[%s3612_s11 + $0x348] sm:$0xff]  ;;  %355 = vst [vmem:[%s3617_s12 + $0x198] sm:$0xff] %v354_v51 }
  0x2a   : > { %357 = vst [vmem:[%s3617_s12 + $0x1a0] sm:$0xff] %v356_v52  ;;  %359 = vst [vmem:[%s3617_s12 + $0x1a8] sm:$0xff] %v358_v53  ;;  %v360_v54 = vld [vmem:[%s3612_s11 + $0x360] sm:$0xff]  ;;  %v362_v55 = vld [vmem:[%s3612_s11 + $0x368] sm:$0xff] }
  0x2b   : > { %v364_v56 = vld [vmem:[%s3612_s11 + $0x380] sm:$0xff]  ;;  %361 = vst [vmem:[%s3617_s12 + $0x1b0] sm:$0xff] %v360_v54  ;;  %363 = vst [vmem:[%s3617_s12 + $0x1b8] sm:$0xff] %v362_v55  ;;  %v366_v57 = vld [vmem:[%s3612_s11 + $0x388] sm:$0xff] }
  0x2c   : > { %365 = vst [vmem:[%s3617_s12 + $0x1c0] sm:$0xff] %v364_v56  ;;  %v368_v58 = vld [vmem:[%s3612_s11 + $0x3a0] sm:$0xff]  ;;  %v370_v59 = vld [vmem:[%s3612_s11 + $0x3a8] sm:$0xff]  ;;  %367 = vst [vmem:[%s3617_s12 + $0x1c8] sm:$0xff] %v366_v57 }
  0x2d   : > { %369 = vst [vmem:[%s3617_s12 + $0x1d0] sm:$0xff] %v368_v58  ;;  %371 = vst [vmem:[%s3617_s12 + $0x1d8] sm:$0xff] %v370_v59  ;;  %v372_v60 = vld [vmem:[%s3612_s11 + $0x3c0] sm:$0xff]  ;;  %v374_v61 = vld [vmem:[%s3612_s11 + $0x3c8] sm:$0xff] }
  0x2e   : > { %v376_v62 = vld [vmem:[%s3612_s11 + $0x3e0] sm:$0xff]  ;;  %373 = vst [vmem:[%s3617_s12 + $0x1e0] sm:$0xff] %v372_v60  ;;  %375 = vst [vmem:[%s3617_s12 + $0x1e8] sm:$0xff] %v374_v61  ;;  %v378_v63 = vld [vmem:[%s3612_s11 + $0x3e8] sm:$0xff] }
  0x2f   : > { %377 = vst [vmem:[%s3617_s12 + $0x1f0] sm:$0xff] %v376_v62  ;;  %v380_v0 = vld [vmem:[%s3612_s11 + $0x400] sm:$0xff]  ;;  %v382_v1 = vld [vmem:[%s3612_s11 + $0x408] sm:$0xff]  ;;  %379 = vst [vmem:[%s3617_s12 + $0x1f8] sm:$0xff] %v378_v63 }
  0x30   : > { %381 = vst [vmem:[%s3617_s12 + $0x200] sm:$0xff] %v380_v0  ;;  %383 = vst [vmem:[%s3617_s12 + $0x208] sm:$0xff] %v382_v1  ;;  %v384_v2 = vld [vmem:[%s3612_s11 + $0x420] sm:$0xff]  ;;  %v386_v3 = vld [vmem:[%s3612_s11 + $0x428] sm:$0xff] }
  0x31   : > { %v388_v4 = vld [vmem:[%s3612_s11 + $0x440] sm:$0xff]  ;;  %385 = vst [vmem:[%s3617_s12 + $0x210] sm:$0xff] %v384_v2  ;;  %387 = vst [vmem:[%s3617_s12 + $0x218] sm:$0xff] %v386_v3  ;;  %v390_v5 = vld [vmem:[%s3612_s11 + $0x448] sm:$0xff] }
  0x32   : > { %389 = vst [vmem:[%s3617_s12 + $0x220] sm:$0xff] %v388_v4  ;;  %v392_v6 = vld [vmem:[%s3612_s11 + $0x460] sm:$0xff]  ;;  %v394_v7 = vld [vmem:[%s3612_s11 + $0x468] sm:$0xff]  ;;  %391 = vst [vmem:[%s3617_s12 + $0x228] sm:$0xff] %v390_v5 }
  0x33   : > { %393 = vst [vmem:[%s3617_s12 + $0x230] sm:$0xff] %v392_v6  ;;  %395 = vst [vmem:[%s3617_s12 + $0x238] sm:$0xff] %v394_v7  ;;  %v396_v8 = vld [vmem:[%s3612_s11 + $0x480] sm:$0xff]  ;;  %v398_v9 = vld [vmem:[%s3612_s11 + $0x488] sm:$0xff] }
  0x34   : > { %v400_v10 = vld [vmem:[%s3612_s11 + $0x4a0] sm:$0xff]  ;;  %397 = vst [vmem:[%s3617_s12 + $0x240] sm:$0xff] %v396_v8  ;;  %399 = vst [vmem:[%s3617_s12 + $0x248] sm:$0xff] %v398_v9  ;;  %v402_v11 = vld [vmem:[%s3612_s11 + $0x4a8] sm:$0xff] }
  0x35   : > { %401 = vst [vmem:[%s3617_s12 + $0x250] sm:$0xff] %v400_v10  ;;  %v404_v12 = vld [vmem:[%s3612_s11 + $0x4c0] sm:$0xff]  ;;  %v406_v13 = vld [vmem:[%s3612_s11 + $0x4c8] sm:$0xff]  ;;  %403 = vst [vmem:[%s3617_s12 + $0x258] sm:$0xff] %v402_v11 }
  0x36   : > { %405 = vst [vmem:[%s3617_s12 + $0x260] sm:$0xff] %v404_v12  ;;  %407 = vst [vmem:[%s3617_s12 + $0x268] sm:$0xff] %v406_v13  ;;  %v408_v14 = vld [vmem:[%s3612_s11 + $0x4e0] sm:$0xff]  ;;  %v410_v15 = vld [vmem:[%s3612_s11 + $0x4e8] sm:$0xff] }
  0x37   : > { %v412_v16 = vld [vmem:[%s3612_s11 + $0x500] sm:$0xff]  ;;  %409 = vst [vmem:[%s3617_s12 + $0x270] sm:$0xff] %v408_v14  ;;  %411 = vst [vmem:[%s3617_s12 + $0x278] sm:$0xff] %v410_v15  ;;  %v414_v17 = vld [vmem:[%s3612_s11 + $0x508] sm:$0xff] }
  0x38   : > { %413 = vst [vmem:[%s3617_s12 + $0x280] sm:$0xff] %v412_v16  ;;  %v416_v18 = vld [vmem:[%s3612_s11 + $0x520] sm:$0xff]  ;;  %v418_v19 = vld [vmem:[%s3612_s11 + $0x528] sm:$0xff]  ;;  %415 = vst [vmem:[%s3617_s12 + $0x288] sm:$0xff] %v414_v17 }
  0x39   : > { %417 = vst [vmem:[%s3617_s12 + $0x290] sm:$0xff] %v416_v18  ;;  %419 = vst [vmem:[%s3617_s12 + $0x298] sm:$0xff] %v418_v19  ;;  %v420_v20 = vld [vmem:[%s3612_s11 + $0x540] sm:$0xff]  ;;  %v422_v21 = vld [vmem:[%s3612_s11 + $0x548] sm:$0xff] }
  0x3a   : > { %v424_v22 = vld [vmem:[%s3612_s11 + $0x560] sm:$0xff]  ;;  %421 = vst [vmem:[%s3617_s12 + $0x2a0] sm:$0xff] %v420_v20  ;;  %423 = vst [vmem:[%s3617_s12 + $0x2a8] sm:$0xff] %v422_v21  ;;  %v426_v23 = vld [vmem:[%s3612_s11 + $0x568] sm:$0xff] }
  0x3b   : > { %425 = vst [vmem:[%s3617_s12 + $0x2b0] sm:$0xff] %v424_v22  ;;  %v428_v24 = vld [vmem:[%s3612_s11 + $0x580] sm:$0xff]  ;;  %v430_v25 = vld [vmem:[%s3612_s11 + $0x588] sm:$0xff]  ;;  %427 = vst [vmem:[%s3617_s12 + $0x2b8] sm:$0xff] %v426_v23 }
  0x3c   : > { %429 = vst [vmem:[%s3617_s12 + $0x2c0] sm:$0xff] %v428_v24  ;;  %431 = vst [vmem:[%s3617_s12 + $0x2c8] sm:$0xff] %v430_v25  ;;  %v432_v26 = vld [vmem:[%s3612_s11 + $0x5a0] sm:$0xff]  ;;  %v434_v27 = vld [vmem:[%s3612_s11 + $0x5a8] sm:$0xff] }
  0x3d   : > { %v436_v28 = vld [vmem:[%s3612_s11 + $0x5c0] sm:$0xff]  ;;  %433 = vst [vmem:[%s3617_s12 + $0x2d0] sm:$0xff] %v432_v26  ;;  %435 = vst [vmem:[%s3617_s12 + $0x2d8] sm:$0xff] %v434_v27  ;;  %v438_v29 = vld [vmem:[%s3612_s11 + $0x5c8] sm:$0xff] }
  0x3e   : > { %437 = vst [vmem:[%s3617_s12 + $0x2e0] sm:$0xff] %v436_v28  ;;  %v440_v30 = vld [vmem:[%s3612_s11 + $0x5e0] sm:$0xff]  ;;  %v442_v31 = vld [vmem:[%s3612_s11 + $0x5e8] sm:$0xff]  ;;  %439 = vst [vmem:[%s3617_s12 + $0x2e8] sm:$0xff] %v438_v29 }
  0x3f   : > { %441 = vst [vmem:[%s3617_s12 + $0x2f0] sm:$0xff] %v440_v30  ;;  %443 = vst [vmem:[%s3617_s12 + $0x2f8] sm:$0xff] %v442_v31  ;;  %v444_v32 = vld [vmem:[%s3612_s11 + $0x600] sm:$0xff]  ;;  %v446_v33 = vld [vmem:[%s3612_s11 + $0x608] sm:$0xff] }
  0x40   : > { %v448_v34 = vld [vmem:[%s3612_s11 + $0x620] sm:$0xff]  ;;  %445 = vst [vmem:[%s3617_s12 + $0x300] sm:$0xff] %v444_v32  ;;  %447 = vst [vmem:[%s3617_s12 + $0x308] sm:$0xff] %v446_v33  ;;  %v450_v35 = vld [vmem:[%s3612_s11 + $0x628] sm:$0xff] }
  0x41   : > { %449 = vst [vmem:[%s3617_s12 + $0x310] sm:$0xff] %v448_v34  ;;  %v452_v36 = vld [vmem:[%s3612_s11 + $0x640] sm:$0xff]  ;;  %v454_v37 = vld [vmem:[%s3612_s11 + $0x648] sm:$0xff]  ;;  %451 = vst [vmem:[%s3617_s12 + $0x318] sm:$0xff] %v450_v35 }
  0x42   : > { %453 = vst [vmem:[%s3617_s12 + $0x320] sm:$0xff] %v452_v36  ;;  %455 = vst [vmem:[%s3617_s12 + $0x328] sm:$0xff] %v454_v37  ;;  %v456_v38 = vld [vmem:[%s3612_s11 + $0x660] sm:$0xff]  ;;  %v458_v39 = vld [vmem:[%s3612_s11 + $0x668] sm:$0xff] }
  0x43   : > { %v460_v40 = vld [vmem:[%s3612_s11 + $0x680] sm:$0xff]  ;;  %457 = vst [vmem:[%s3617_s12 + $0x330] sm:$0xff] %v456_v38  ;;  %459 = vst [vmem:[%s3617_s12 + $0x338] sm:$0xff] %v458_v39  ;;  %v462_v41 = vld [vmem:[%s3612_s11 + $0x688] sm:$0xff] }
  0x44   : > { %461 = vst [vmem:[%s3617_s12 + $0x340] sm:$0xff] %v460_v40  ;;  %v464_v42 = vld [vmem:[%s3612_s11 + $0x6a0] sm:$0xff]  ;;  %v466_v43 = vld [vmem:[%s3612_s11 + $0x6a8] sm:$0xff]  ;;  %463 = vst [vmem:[%s3617_s12 + $0x348] sm:$0xff] %v462_v41 }
  0x45   : > { %465 = vst [vmem:[%s3617_s12 + $0x350] sm:$0xff] %v464_v42  ;;  %467 = vst [vmem:[%s3617_s12 + $0x358] sm:$0xff] %v466_v43  ;;  %v468_v44 = vld [vmem:[%s3612_s11 + $0x6c0] sm:$0xff]  ;;  %v470_v45 = vld [vmem:[%s3612_s11 + $0x6c8] sm:$0xff] }
  0x46   : > { %v472_v46 = vld [vmem:[%s3612_s11 + $0x6e0] sm:$0xff]  ;;  %469 = vst [vmem:[%s3617_s12 + $0x360] sm:$0xff] %v468_v44  ;;  %471 = vst [vmem:[%s3617_s12 + $0x368] sm:$0xff] %v470_v45  ;;  %v474_v47 = vld [vmem:[%s3612_s11 + $0x6e8] sm:$0xff] }
  0x47   : > { %473 = vst [vmem:[%s3617_s12 + $0x370] sm:$0xff] %v472_v46  ;;  %v476_v48 = vld [vmem:[%s3612_s11 + $0x700] sm:$0xff]  ;;  %v478_v49 = vld [vmem:[%s3612_s11 + $0x708] sm:$0xff]  ;;  %475 = vst [vmem:[%s3617_s12 + $0x378] sm:$0xff] %v474_v47 }
  0x48   : > { %477 = vst [vmem:[%s3617_s12 + $0x380] sm:$0xff] %v476_v48  ;;  %479 = vst [vmem:[%s3617_s12 + $0x388] sm:$0xff] %v478_v49  ;;  %v480_v50 = vld [vmem:[%s3612_s11 + $0x720] sm:$0xff]  ;;  %v482_v51 = vld [vmem:[%s3612_s11 + $0x728] sm:$0xff] }
  0x49   : > { %v484_v52 = vld [vmem:[%s3612_s11 + $0x740] sm:$0xff]  ;;  %481 = vst [vmem:[%s3617_s12 + $0x390] sm:$0xff] %v480_v50  ;;  %483 = vst [vmem:[%s3617_s12 + $0x398] sm:$0xff] %v482_v51  ;;  %v486_v53 = vld [vmem:[%s3612_s11 + $0x748] sm:$0xff] }
  0x4a   : > { %485 = vst [vmem:[%s3617_s12 + $0x3a0] sm:$0xff] %v484_v52  ;;  %v488_v54 = vld [vmem:[%s3612_s11 + $0x760] sm:$0xff]  ;;  %v490_v55 = vld [vmem:[%s3612_s11 + $0x768] sm:$0xff]  ;;  %487 = vst [vmem:[%s3617_s12 + $0x3a8] sm:$0xff] %v486_v53 }
  0x4b   : > { %489 = vst [vmem:[%s3617_s12 + $0x3b0] sm:$0xff] %v488_v54  ;;  %491 = vst [vmem:[%s3617_s12 + $0x3b8] sm:$0xff] %v490_v55  ;;  %v492_v56 = vld [vmem:[%s3612_s11 + $0x780] sm:$0xff]  ;;  %v494_v57 = vld [vmem:[%s3612_s11 + $0x788] sm:$0xff] }
  0x4c   : > { %v496_v58 = vld [vmem:[%s3612_s11 + $0x7a0] sm:$0xff]  ;;  %493 = vst [vmem:[%s3617_s12 + $0x3c0] sm:$0xff] %v492_v56  ;;  %495 = vst [vmem:[%s3617_s12 + $0x3c8] sm:$0xff] %v494_v57  ;;  %v498_v59 = vld [vmem:[%s3612_s11 + $0x7a8] sm:$0xff] }
  0x4d   : > { %497 = vst [vmem:[%s3617_s12 + $0x3d0] sm:$0xff] %v496_v58  ;;  %v500_v60 = vld [vmem:[%s3612_s11 + $0x7c0] sm:$0xff]  ;;  %v502_v61 = vld [vmem:[%s3612_s11 + $0x7c8] sm:$0xff]  ;;  %499 = vst [vmem:[%s3617_s12 + $0x3d8] sm:$0xff] %v498_v59 }
  0x4e   : > { %501 = vst [vmem:[%s3617_s12 + $0x3e0] sm:$0xff] %v500_v60  ;;  %503 = vst [vmem:[%s3617_s12 + $0x3e8] sm:$0xff] %v502_v61  ;;  %v504_v62 = vld [vmem:[%s3612_s11 + $0x7e0] sm:$0xff]  ;;  %v506_v63 = vld [vmem:[%s3612_s11 + $0x7e8] sm:$0xff] }
  0x4f   : > { %505 = vst [vmem:[%s3617_s12 + $0x3f0] sm:$0xff] %v504_v62  ;;  %507 = vst [vmem:[%s3617_s12 + $0x3f8] sm:$0xff] %v506_v63 }
  0x50 PF: > { %p2910_p6 = scmp.ge.s32.totalorder %s3531_s25, 1  ;;  %p544_p7 = scmp.lt.s32.totalorder %s3531_s25, 3 }
  0x52   : > { %p545_p8 = pnand %p2910_p6, %p544_p7 }
  0x53   : > { %s551_s13 = sand.u32 (!%p545_p8), 1, %s3515_s21   ;;  %s2912_s17 = sshll.u32 (!%p545_p8), %s3523_s23, 2 }
  0x54   : > { %548 = sbr.rel (%p545_p8) target bundleno = 761 (0x2f9), region = 63  ;;  %s2911_s14 = sshll.u32 (!%p545_p8), %s551_s13, 10 }
  0x55   : > { %s3885_s19 = scalar_lea.vmem (!%p545_p8), [#allocation3], %s2911_s14  ;;  %p601_p10 = scmp.lt.s32.totalorder (!%p545_p8), %s2912_s17, 7 }
  0x56   : > { %p631_p11 = scmp.eq.s32.totalorder (!%p545_p8), %s3523_s23, 0  ;;  %p622_p12 = scmp.lt.s32.totalorder (!%p545_p8), %s3523_s23, 1 }
  0x59   : > { %v3878_v0 = vld [vmem:[%s4711_s0 + $0x4] ss:$16 sps:$4 sm:$0xff]   ;;  %v3883_v1 = vld [vmem:[%s4711_s0 + $0xc] ss:$16 sps:$4 sm:$0xff]   ;;  %v3177_v4 = vld [vmem:[%s3885_s19 + $0xe0] ss:$16 sps:$4 sm:$0xff]  }
  0x5a   : > { %v3173_v2 = vld [vmem:[%s3885_s19 + $0xe4] ss:$16 sps:$4 sm:$0xff]   ;;  %1560 = vmatprep.mubr.bf16.mxu0 %v3878_v0  ;;  %1633 = vmatprep.mubr.bf16.mxu1 %v3883_v1  ;;  %v3178_v5 = vld [vmem:[%s3885_s19 + $0x2e0] ss:$16 sps:$4 sm:$0xff]   ;;  %s4727_s17 = smov (!%p601_p10, %s2912_s17), 7 }
  0x5b   : > { %v3175_v3 = vld [vmem:[%s3885_s19 + $0x2e4] ss:$16 sps:$4 sm:$0xff]   ;;  %1528 = vmatprep.subr.bf16.mxu0 %v3173_v2  ;;  %v3183_v8 = vld [vmem:[%s3885_s19 + $0xc0] ss:$16 sps:$4 sm:$0xff]   ;;  %s603_s21 = scalar_lea.vmem %s4713_s2, %s4727_s17  ;;  %s610_s30 = scalar_lea.vmem %s4714_s3, %s4727_s17 }
  0x5c   : > { %1601 = vmatprep.subr.bf16.mxu1 %v3175_v3  ;;  %v3179_v6 = vld [vmem:[%s3885_s19 + $0xc4] ss:$16 sps:$4 sm:$0xff]   ;;  %1529 = vmatpush1.bf16.msra.mxu0 %v3177_v4  ;;  %v3184_v9 = vld [vmem:[%s3885_s19 + $0x2c0] ss:$16 sps:$4 sm:$0xff]   ;;  %v3277_v4 = vld [vmem:[%s3885_s19 + $0xec] ss:$16 sps:$4 sm:$0xff]  }
  0x5d   : > { %1602 = vmatpush1.bf16.msra.mxu1 %v3178_v5  ;;  %v3181_v7 = vld [vmem:[%s3885_s19 + $0x2c4] ss:$16 sps:$4 sm:$0xff]   ;;  %1530 = vmatprep.subr.bf16.mxu0 %v3179_v6  ;;  %v3189_v12 = vld [vmem:[%s3885_s19 + $0xa0] ss:$16 sps:$4 sm:$0xff]   ;;  %v3280_v6 = vld [vmem:[%s3885_s19 + $0x2ec] ss:$16 sps:$4 sm:$0xff]  }
  0x5e   : > { %1603 = vmatprep.subr.bf16.mxu1 %v3181_v7  ;;  %v3185_v10 = vld [vmem:[%s3885_s19 + $0xa4] ss:$16 sps:$4 sm:$0xff]   ;;  %v3190_v13 = vld [vmem:[%s3885_s19 + $0x2a0] ss:$16 sps:$4 sm:$0xff]   ;;  %v3963_v7 = vld [vmem:[%s4711_s0 + $0x8] ss:$16 sps:$4 sm:$0xff]  }
  0x5f   : > { %v3187_v11 = vld [vmem:[%s3885_s19 + $0x2a4] ss:$16 sps:$4 sm:$0xff]   ;;  %v3195_v16 = vld [vmem:[%s3885_s19 + $0x80] ss:$16 sps:$4 sm:$0xff]   ;;  %s633_s7 = scalar_select %p631_p11, 1, 0 }
  0x60   : > { %1531 = vmatpush1.bf16.msra.mxu0 %v3183_v8  ;;  %v3191_v14 = vld [vmem:[%s3885_s19 + $0x84] ss:$16 sps:$4 sm:$0xff]   ;;  %v3196_v17 = vld [vmem:[%s3885_s19 + $0x280] ss:$16 sps:$4 sm:$0xff]   ;;  %v3275_v8 = vld [vmem:[%s3885_s19 + $0xe8] ss:$16 sps:$4 sm:$0xff]  }
  0x61   : > { %1604 = vmatpush1.bf16.msra.mxu1 %v3184_v9  ;;  %1532 = vmatprep.subr.bf16.mxu0 %v3185_v10  ;;  %v3193_v15 = vld [vmem:[%s3885_s19 + $0x284] ss:$16 sps:$4 sm:$0xff]   ;;  %v3201_v20 = vld [vmem:[%s3885_s19 + $0x60] ss:$16 sps:$4 sm:$0xff]   ;;  %v3278_v9 = vld [vmem:[%s3885_s19 + $0x2e8] ss:$16 sps:$4 sm:$0xff]  }
  0x62   : > { %1605 = vmatprep.subr.bf16.mxu1 %v3187_v11  ;;  %v3197_v18 = vld [vmem:[%s3885_s19 + $0x64] ss:$16 sps:$4 sm:$0xff]   ;;  %v3202_v21 = vld [vmem:[%s3885_s19 + $0x260] ss:$16 sps:$4 sm:$0xff]   ;;  %v3283_v10 = vld [vmem:[%s3885_s19 + $0xcc] ss:$16 sps:$4 sm:$0xff]  }
  0x63   : > { %v3199_v19 = vld [vmem:[%s3885_s19 + $0x264] ss:$16 sps:$4 sm:$0xff]   ;;  %v3207_v24 = vld [vmem:[%s3885_s19 + $0x40] ss:$16 sps:$4 sm:$0xff]   ;;  %v3286_v11 = vld [vmem:[%s3885_s19 + $0x2cc] ss:$16 sps:$4 sm:$0xff]  }
  0x64   : > { %1533 = vmatpush1.bf16.msra.mxu0 %v3189_v12  ;;  %v3203_v22 = vld [vmem:[%s3885_s19 + $0x44] ss:$16 sps:$4 sm:$0xff]   ;;  %v3208_v25 = vld [vmem:[%s3885_s19 + $0x240] ss:$16 sps:$4 sm:$0xff]  }
  0x65   : > { %1606 = vmatpush1.bf16.msra.mxu1 %v3190_v13  ;;  %1534 = vmatprep.subr.bf16.mxu0 %v3191_v14  ;;  %v3205_v23 = vld [vmem:[%s3885_s19 + $0x244] ss:$16 sps:$4 sm:$0xff]   ;;  %v3213_v28 = vld [vmem:[%s3885_s19 + $0x20] ss:$16 sps:$4 sm:$0xff]   ;;  %v3977_v13 = vld [vmem:[%s4711_s0 + $0x2c] ss:$16 sps:$4 sm:$0xff]  }
  0x66   : > { %1607 = vmatprep.subr.bf16.mxu1 %v3193_v15  ;;  %v3209_v26 = vld [vmem:[%s3885_s19 + $0x24] ss:$16 sps:$4 sm:$0xff]   ;;  %v3214_v29 = vld [vmem:[%s3885_s19 + $0x220] ss:$16 sps:$4 sm:$0xff]   ;;  %v3281_v14 = vld [vmem:[%s3885_s19 + $0xc8] ss:$16 sps:$4 sm:$0xff]  }
  0x67   : > { %v3211_v27 = vld [vmem:[%s3885_s19 + $0x224] ss:$16 sps:$4 sm:$0xff]   ;;  %v3219_v32 = vld [vmem:[%s3885_s19] ss:$16 sps:$4 sm:$0xff]   ;;  %v3284_v15 = vld [vmem:[%s3885_s19 + $0x2c8] ss:$16 sps:$4 sm:$0xff]  }
  0x68   : > { %1535 = vmatpush1.bf16.msra.mxu0 %v3195_v16  ;;  %v3215_v30 = vld [vmem:[%s3885_s19 + $0x4] ss:$16 sps:$4 sm:$0xff]   ;;  %v3220_v33 = vld [vmem:[%s3885_s19 + $0x200] ss:$16 sps:$4 sm:$0xff]   ;;  %v3295_v16 = vld [vmem:[%s3885_s19 + $0xac] ss:$16 sps:$4 sm:$0xff]  }
  0x69   : > { %1608 = vmatpush1.bf16.msra.mxu1 %v3196_v17  ;;  %1536 = vmatprep.subr.bf16.mxu0 %v3197_v18  ;;  %v3217_v31 = vld [vmem:[%s3885_s19 + $0x204] ss:$16 sps:$4 sm:$0xff]   ;;  %v3225_v36 = vld [vmem:[%s3885_s19 + $0x1e0] ss:$16 sps:$4 sm:$0xff]   ;;  %v3298_v18 = vld [vmem:[%s3885_s19 + $0x2ac] ss:$16 sps:$4 sm:$0xff]  }
  0x6a   : > { %1609 = vmatprep.subr.bf16.mxu1 %v3199_v19  ;;  %v3221_v34 = vld [vmem:[%s3885_s19 + $0x1e4] ss:$16 sps:$4 sm:$0xff]   ;;  %v3226_v37 = vld [vmem:[%s3885_s19 + $0x3e0] ss:$16 sps:$4 sm:$0xff]   ;;  %v3995_v19 = vld [vmem:[%s4711_s0 + $0x28] ss:$16 sps:$4 sm:$0xff]  }
  0x6b   : > { %v3223_v35 = vld [vmem:[%s3885_s19 + $0x3e4] ss:$16 sps:$4 sm:$0xff]   ;;  %v3231_v40 = vld [vmem:[%s3885_s19 + $0x1c0] ss:$16 sps:$4 sm:$0xff]  }
  0x6c   : > { %1537 = vmatpush1.bf16.msra.mxu0 %v3201_v20  ;;  %v3227_v38 = vld [vmem:[%s3885_s19 + $0x1c4] ss:$16 sps:$4 sm:$0xff]   ;;  %v3232_v41 = vld [vmem:[%s3885_s19 + $0x3c0] ss:$16 sps:$4 sm:$0xff]   ;;  %v3293_v20 = vld [vmem:[%s3885_s19 + $0xa8] ss:$16 sps:$4 sm:$0xff]  }
  0x6d   : > { %1610 = vmatpush1.bf16.msra.mxu1 %v3202_v21  ;;  %1538 = vmatprep.subr.bf16.mxu0 %v3203_v22  ;;  %v3229_v39 = vld [vmem:[%s3885_s19 + $0x3c4] ss:$16 sps:$4 sm:$0xff]   ;;  %v3237_v44 = vld [vmem:[%s3885_s19 + $0x1a0] ss:$16 sps:$4 sm:$0xff]   ;;  %v3296_v21 = vld [vmem:[%s3885_s19 + $0x2a8] ss:$16 sps:$4 sm:$0xff]  }
  0x6e   : > { %1611 = vmatprep.subr.bf16.mxu1 %v3205_v23  ;;  %v3233_v42 = vld [vmem:[%s3885_s19 + $0x1a4] ss:$16 sps:$4 sm:$0xff]   ;;  %v3238_v45 = vld [vmem:[%s3885_s19 + $0x3a0] ss:$16 sps:$4 sm:$0xff]   ;;  %v3301_v22 = vld [vmem:[%s3885_s19 + $0x8c] ss:$16 sps:$4 sm:$0xff]  }
  0x6f   : > { %v3235_v43 = vld [vmem:[%s3885_s19 + $0x3a4] ss:$16 sps:$4 sm:$0xff]   ;;  %v3243_v48 = vld [vmem:[%s3885_s19 + $0x180] ss:$16 sps:$4 sm:$0xff]   ;;  %v3304_v23 = vld [vmem:[%s3885_s19 + $0x28c] ss:$16 sps:$4 sm:$0xff]  }
  0x70   : > { %1539 = vmatpush1.bf16.msra.mxu0 %v3207_v24  ;;  %v3239_v46 = vld [vmem:[%s3885_s19 + $0x184] ss:$16 sps:$4 sm:$0xff]   ;;  %v3244_v49 = vld [vmem:[%s3885_s19 + $0x380] ss:$16 sps:$4 sm:$0xff]  }
  0x71   : > { %1612 = vmatpush1.bf16.msra.mxu1 %v3208_v25  ;;  %1540 = vmatprep.subr.bf16.mxu0 %v3209_v26  ;;  %v3241_v47 = vld [vmem:[%s3885_s19 + $0x384] ss:$16 sps:$4 sm:$0xff]   ;;  %v3249_v52 = vld [vmem:[%s3885_s19 + $0x160] ss:$16 sps:$4 sm:$0xff]   ;;  %v4009_v25 = vld [vmem:[%s4711_s0 + $0x4c] ss:$16 sps:$4 sm:$0xff]  }
  0x72   : > { %1613 = vmatprep.subr.bf16.mxu1 %v3211_v27  ;;  %v3245_v50 = vld [vmem:[%s3885_s19 + $0x164] ss:$16 sps:$4 sm:$0xff]   ;;  %v3250_v53 = vld [vmem:[%s3885_s19 + $0x360] ss:$16 sps:$4 sm:$0xff]   ;;  %v3299_v26 = vld [vmem:[%s3885_s19 + $0x88] ss:$16 sps:$4 sm:$0xff]  }
  0x73   : > { %v3247_v51 = vld [vmem:[%s3885_s19 + $0x364] ss:$16 sps:$4 sm:$0xff]   ;;  %v3255_v56 = vld [vmem:[%s3885_s19 + $0x140] ss:$16 sps:$4 sm:$0xff]   ;;  %v3302_v27 = vld [vmem:[%s3885_s19 + $0x288] ss:$16 sps:$4 sm:$0xff]  }
  0x74   : > { %1541 = vmatpush1.bf16.msra.mxu0 %v3213_v28  ;;  %v3251_v54 = vld [vmem:[%s3885_s19 + $0x144] ss:$16 sps:$4 sm:$0xff]   ;;  %v3256_v57 = vld [vmem:[%s3885_s19 + $0x340] ss:$16 sps:$4 sm:$0xff]   ;;  %v3313_v28 = vld [vmem:[%s3885_s19 + $0x6c] ss:$16 sps:$4 sm:$0xff]  }
  0x75   : > { %1614 = vmatpush1.bf16.msra.mxu1 %v3214_v29  ;;  %1542 = vmatprep.subr.bf16.mxu0 %v3215_v30  ;;  %v3253_v55 = vld [vmem:[%s3885_s19 + $0x344] ss:$16 sps:$4 sm:$0xff]   ;;  %v3261_v60 = vld [vmem:[%s3885_s19 + $0x120] ss:$16 sps:$4 sm:$0xff]   ;;  %v3316_v30 = vld [vmem:[%s3885_s19 + $0x26c] ss:$16 sps:$4 sm:$0xff]  }
  0x76   : > { %1615 = vmatprep.subr.bf16.mxu1 %v3217_v31  ;;  %v3257_v58 = vld [vmem:[%s3885_s19 + $0x124] ss:$16 sps:$4 sm:$0xff]   ;;  %v3262_v61 = vld [vmem:[%s3885_s19 + $0x320] ss:$16 sps:$4 sm:$0xff]   ;;  %v4027_v31 = vld [vmem:[%s4711_s0 + $0x48] ss:$16 sps:$4 sm:$0xff]  }
  0x77   : > { %v3259_v59 = vld [vmem:[%s3885_s19 + $0x324] ss:$16 sps:$4 sm:$0xff]   ;;  %v3267_v2 = vld [vmem:[%s3885_s19 + $0x100] ss:$16 sps:$4 sm:$0xff]  }
  0x78   : > { %1543 = vmatpush1.bf16.msra.mxu0 %v3219_v32  ;;  %v3263_v62 = vld [vmem:[%s3885_s19 + $0x104] ss:$16 sps:$4 sm:$0xff]   ;;  %v3268_v3 = vld [vmem:[%s3885_s19 + $0x300] ss:$16 sps:$4 sm:$0xff]   ;;  %v3311_v32 = vld [vmem:[%s3885_s19 + $0x68] ss:$16 sps:$4 sm:$0xff]  }
  0x79   : > { %1616 = vmatpush1.bf16.msra.mxu1 %v3220_v33  ;;  %1544 = vmatprep.subr.bf16.mxu0 %v3221_v34  ;;  %v3265_v63 = vld [vmem:[%s3885_s19 + $0x304] ss:$16 sps:$4 sm:$0xff]   ;;  %v3957_v5 = vld [vmem:[%s4711_s0] ss:$16 sps:$4 sm:$0xff]   ;;  %v3314_v33 = vld [vmem:[%s3885_s19 + $0x268] ss:$16 sps:$4 sm:$0xff]  }
  0x7a   : > { %1617 = vmatprep.subr.bf16.mxu1 %v3223_v35  ;;  %v3972_v12 = vld [vmem:[%s4711_s0 + $0x24] ss:$16 sps:$4 sm:$0xff]   ;;  %v3987_v17 = vld [vmem:[%s4711_s0 + $0x20] ss:$16 sps:$4 sm:$0xff]   ;;  %v3319_v34 = vld [vmem:[%s3885_s19 + $0x4c] ss:$16 sps:$4 sm:$0xff]  }
  0x7b   : > { %v4004_v24 = vld [vmem:[%s4711_s0 + $0x44] ss:$16 sps:$4 sm:$0xff]   ;;  %v4019_v29 = vld [vmem:[%s4711_s0 + $0x40] ss:$16 sps:$4 sm:$0xff]   ;;  %v3322_v35 = vld [vmem:[%s3885_s19 + $0x24c] ss:$16 sps:$4 sm:$0xff]  }
  0x7c   : > { %1545 = vmatpush2.bf16.msra.mxu0 %v3225_v36  ;;  %v4036_v36 = vld [vmem:[%s4711_s0 + $0x64] ss:$16 sps:$4 sm:$0xff]  }
  0x7d   : > { %1618 = vmatpush2.bf16.msra.mxu1 %v3226_v37  ;;  %1546 = vmatprep.subr.bf16.mxu0 %v3227_v38  ;;  %v4041_v37 = vld [vmem:[%s4711_s0 + $0x6c] ss:$16 sps:$4 sm:$0xff]   ;;  %v3317_v38 = vld [vmem:[%s3885_s19 + $0x48] ss:$16 sps:$4 sm:$0xff]  }
  0x7e   : > { %1619 = vmatprep.subr.bf16.mxu1 %v3229_v39  ;;  %v3320_v39 = vld [vmem:[%s3885_s19 + $0x248] ss:$16 sps:$4 sm:$0xff]  }
  0x80   : > { %1547 = vmatpush2.bf16.msra.mxu0 %v3231_v40  ;;  %v3331_v40 = vld [vmem:[%s3885_s19 + $0x2c] ss:$16 sps:$4 sm:$0xff]  }
  0x81   : > { %1620 = vmatpush2.bf16.msra.mxu1 %v3232_v41  ;;  %1548 = vmatprep.subr.bf16.mxu0 %v3233_v42  ;;  %v3334_v41 = vld [vmem:[%s3885_s19 + $0x22c] ss:$16 sps:$4 sm:$0xff]   ;;  %v4054_v42 = vld [vmem:[%s4711_s0 + $0x60] ss:$16 sps:$4 sm:$0xff]  }
  0x82   : > { %1621 = vmatprep.subr.bf16.mxu1 %v3235_v43  ;;  %v4059_v43 = vld [vmem:[%s4711_s0 + $0x68] ss:$16 sps:$4 sm:$0xff]  }
  0x84   : > { %1549 = vmatpush2.bf16.msra.mxu0 %v3237_v44  ;;  %v3329_v44 = vld [vmem:[%s3885_s19 + $0x28] ss:$16 sps:$4 sm:$0xff]  }
  0x85   : > { %1622 = vmatpush2.bf16.msra.mxu1 %v3238_v45  ;;  %1550 = vmatprep.subr.bf16.mxu0 %v3239_v46  ;;  %v3332_v45 = vld [vmem:[%s3885_s19 + $0x228] ss:$16 sps:$4 sm:$0xff]   ;;  %v3337_v46 = vld [vmem:[%s3885_s19 + $0xc] ss:$16 sps:$4 sm:$0xff]  }
  0x86   : > { %1623 = vmatprep.subr.bf16.mxu1 %v3241_v47  ;;  %v3340_v47 = vld [vmem:[%s3885_s19 + $0x20c] ss:$16 sps:$4 sm:$0xff]  }
  0x88   : > { %1551 = vmatpush2.bf16.msra.mxu0 %v3243_v48  ;;  %v3335_v48 = vld [vmem:[%s3885_s19 + $0x8] ss:$16 sps:$4 sm:$0xff]  }
  0x89   : > { %1624 = vmatpush2.bf16.msra.mxu1 %v3244_v49  ;;  %1552 = vmatprep.subr.bf16.mxu0 %v3245_v50  ;;  %v3338_v49 = vld [vmem:[%s3885_s19 + $0x208] ss:$16 sps:$4 sm:$0xff]   ;;  %v3343_v50 = vld [vmem:[%s3885_s19 + $0x1ec] ss:$16 sps:$4 sm:$0xff]  }
  0x8a   : > { %1625 = vmatprep.subr.bf16.mxu1 %v3247_v51  ;;  %v3346_v51 = vld [vmem:[%s3885_s19 + $0x3ec] ss:$16 sps:$4 sm:$0xff]  }
  0x8c   : > { %1553 = vmatpush2.bf16.msra.mxu0 %v3249_v52  ;;  %v3341_v52 = vld [vmem:[%s3885_s19 + $0x1e8] ss:$16 sps:$4 sm:$0xff]  }
  0x8d   : > { %1626 = vmatpush2.bf16.msra.mxu1 %v3250_v53  ;;  %1554 = vmatprep.subr.bf16.mxu0 %v3251_v54  ;;  %v3344_v53 = vld [vmem:[%s3885_s19 + $0x3e8] ss:$16 sps:$4 sm:$0xff]   ;;  %v3349_v54 = vld [vmem:[%s3885_s19 + $0x1cc] ss:$16 sps:$4 sm:$0xff]  }
  0x8e   : > { %1627 = vmatprep.subr.bf16.mxu1 %v3253_v55  ;;  %v3352_v55 = vld [vmem:[%s3885_s19 + $0x3cc] ss:$16 sps:$4 sm:$0xff]  }
  0x90   : > { %1555 = vmatpush2.bf16.msra.mxu0 %v3255_v56  ;;  %v3347_v56 = vld [vmem:[%s3885_s19 + $0x1c8] ss:$16 sps:$4 sm:$0xff]  }
  0x91   : > { %1628 = vmatpush2.bf16.msra.mxu1 %v3256_v57  ;;  %1556 = vmatprep.subr.bf16.mxu0 %v3257_v58  ;;  %v3358_v57 = vld [vmem:[%s3885_s19 + $0x3ac] ss:$16 sps:$4 sm:$0xff]   ;;  %v3353_v58 = vld [vmem:[%s3885_s19 + $0x1a8] ss:$16 sps:$4 sm:$0xff]  }
  0x92   : > { %1629 = vmatprep.subr.bf16.mxu1 %v3259_v59  ;;  %v3356_v59 = vld [vmem:[%s3885_s19 + $0x3a8] ss:$16 sps:$4 sm:$0xff]  }
  0x94   : > { %1557 = vmatpush2.bf16.msra.mxu0 %v3261_v60  ;;  %v3361_v60 = vld [vmem:[%s3885_s19 + $0x18c] ss:$16 sps:$4 sm:$0xff]  }
  0x95   : > { %1630 = vmatpush2.bf16.msra.mxu1 %v3262_v61  ;;  %1558 = vmatprep.subr.bf16.mxu0 %v3263_v62  ;;  %v3364_v61 = vld [vmem:[%s3885_s19 + $0x38c] ss:$16 sps:$4 sm:$0xff]   ;;  %v3359_v62 = vld [vmem:[%s3885_s19 + $0x188] ss:$16 sps:$4 sm:$0xff]  }
  0x96   : > { %1631 = vmatprep.subr.bf16.mxu1 %v3265_v63  ;;  %v3362_v63 = vld [vmem:[%s3885_s19 + $0x388] ss:$16 sps:$4 sm:$0xff]  }
  0x98   : > { %1559 = vmatpush2.bf16.msra.mxu0 %v3267_v2  ;;  %v3367_v2 = vld [vmem:[%s3885_s19 + $0x16c] ss:$16 sps:$4 sm:$0xff]  }
  0x99   : > { %1632 = vmatpush2.bf16.msra.mxu1 %v3268_v3  ;;  %1674 = vmatprep.subr.bf16.mxu0 %v3277_v4  ;;  %v3370_v3 = vld [vmem:[%s3885_s19 + $0x36c] ss:$16 sps:$4 sm:$0xff]   ;;  %v3365_v4 = vld [vmem:[%s3885_s19 + $0x168] ss:$16 sps:$4 sm:$0xff]  }
  0x9a   : > { %1747 = vmatprep.subr.bf16.mxu1 %v3280_v6  ;;  %v3368_v6 = vld [vmem:[%s3885_s19 + $0x368] ss:$16 sps:$4 sm:$0xff]  }
  0x9b   : > { %1561 = vmatmul.mubr.bf16.vlgmr.msra.gmra.mxu0 %v3957_v5 }
  0x9c   : > { %1634 = vmatmul.mubr.bf16.vlgmr.msra.gmra.mxu1 %v3963_v7  ;;  %1675 = vmatpush1.bf16.msra.mxu0 %v3275_v8  ;;  %v3373_v8 = vld [vmem:[%s3885_s19 + $0x14c] ss:$16 sps:$4 sm:$0xff]  }
  0x9d   : > { %1748 = vmatpush1.bf16.msra.mxu1 %v3278_v9  ;;  %1676 = vmatprep.subr.bf16.mxu0 %v3283_v10  ;;  %v3376_v9 = vld [vmem:[%s3885_s19 + $0x34c] ss:$16 sps:$4 sm:$0xff]   ;;  %v3371_v10 = vld [vmem:[%s3885_s19 + $0x148] ss:$16 sps:$4 sm:$0xff]  }
  0x9e   : > { %1749 = vmatprep.subr.bf16.mxu1 %v3286_v11  ;;  %1570 = vmatprep.mubr.bf16.mxu0 %v3972_v12  ;;  %v3374_v11 = vld [vmem:[%s3885_s19 + $0x348] ss:$16 sps:$4 sm:$0xff]  }
  0x9f   : > { %1643 = vmatprep.mubr.bf16.mxu1 %v3977_v13 }
  0xa0   : > { %1677 = vmatpush1.bf16.msra.mxu0 %v3281_v14  ;;  %v3379_v14 = vld [vmem:[%s3885_s19 + $0x12c] ss:$16 sps:$4 sm:$0xff]  }
  0xa1   : > { %1750 = vmatpush1.bf16.msra.mxu1 %v3284_v15  ;;  %1678 = vmatprep.subr.bf16.mxu0 %v3295_v16  ;;  %v3382_v15 = vld [vmem:[%s3885_s19 + $0x32c] ss:$16 sps:$4 sm:$0xff]   ;;  %v3377_v16 = vld [vmem:[%s3885_s19 + $0x128] ss:$16 sps:$4 sm:$0xff]  }
  0xa2   : > { %1751 = vmatprep.subr.bf16.mxu1 %v3298_v18  ;;  %v3380_v18 = vld [vmem:[%s3885_s19 + $0x328] ss:$16 sps:$4 sm:$0xff]  }
  0xa3   : > { %1571 = vmatmul.mubr.bf16.gmra.mxu0 %v3987_v17 }
  0xa4   : > { %1644 = vmatmul.mubr.bf16.gmra.mxu1 %v3995_v19  ;;  %1679 = vmatpush1.bf16.msra.mxu0 %v3293_v20  ;;  %v3385_v20 = vld [vmem:[%s3885_s19 + $0x10c] ss:$16 sps:$4 sm:$0xff]  }
  0xa5   : > { %1752 = vmatpush1.bf16.msra.mxu1 %v3296_v21  ;;  %1680 = vmatprep.subr.bf16.mxu0 %v3301_v22  ;;  %v3388_v21 = vld [vmem:[%s3885_s19 + $0x30c] ss:$16 sps:$4 sm:$0xff]   ;;  %v3383_v22 = vld [vmem:[%s3885_s19 + $0x108] ss:$16 sps:$4 sm:$0xff]  }
  0xa6   : > { %1753 = vmatprep.subr.bf16.mxu1 %v3304_v23  ;;  %1580 = vmatprep.mubr.bf16.mxu0 %v4004_v24  ;;  %v3386_v23 = vld [vmem:[%s3885_s19 + $0x308] ss:$16 sps:$4 sm:$0xff]  }
  0xa7   : > { %1653 = vmatprep.mubr.bf16.mxu1 %v4009_v25 }
  0xa8   : > { %1681 = vmatpush1.bf16.msra.mxu0 %v3299_v26 }
  0xa9   : > { %1754 = vmatpush1.bf16.msra.mxu1 %v3302_v27  ;;  %1682 = vmatprep.subr.bf16.mxu0 %v3313_v28 }
  0xaa   : > { %1755 = vmatprep.subr.bf16.mxu1 %v3316_v30 }
  0xab   : > { %1581 = vmatmul.mubr.bf16.gmra.mxu0 %v4019_v29 }
  0xac   : > { %1654 = vmatmul.mubr.bf16.gmra.mxu1 %v4027_v31  ;;  %1683 = vmatpush1.bf16.msra.mxu0 %v3311_v32 }
  0xad   : > { %1756 = vmatpush1.bf16.msra.mxu1 %v3314_v33  ;;  %1684 = vmatprep.subr.bf16.mxu0 %v3319_v34 }
  0xae   : > { %1757 = vmatprep.subr.bf16.mxu1 %v3322_v35  ;;  %1590 = vmatprep.mubr.bf16.mxu0 %v4036_v36 }
  0xaf   : > { %1663 = vmatprep.mubr.bf16.mxu1 %v4041_v37 }
  0xb0   : > { %1685 = vmatpush1.bf16.msra.mxu0 %v3317_v38 }
  0xb1   : > { %1758 = vmatpush1.bf16.msra.mxu1 %v3320_v39  ;;  %1686 = vmatprep.subr.bf16.mxu0 %v3331_v40 }
  0xb2   : > { %1759 = vmatprep.subr.bf16.mxu1 %v3334_v41 }
  0xb3   : > { %1591 = vmatmul.mubr.bf16.gmra.mxu0 %v4054_v42 }
  0xb4   : > { %1664 = vmatmul.mubr.bf16.gmra.mxu1 %v4059_v43  ;;  %1687 = vmatpush1.bf16.msra.mxu0 %v3329_v44 }
  0xb5   : > { %1760 = vmatpush1.bf16.msra.mxu1 %v3332_v45  ;;  %1688 = vmatprep.subr.bf16.mxu0 %v3337_v46 }
  0xb6   : > { %1761 = vmatprep.subr.bf16.mxu1 %v3340_v47  ;;  %1706 = vmatprep.mubr.bf16.mxu0 %v3878_v0  ;;  %v3350_v0 = vld [vmem:[%s3885_s19 + $0x3c8] ss:$16 sps:$4 sm:$0xff]  }
  0xb7   : > { %1779 = vmatprep.mubr.bf16.mxu1 %v3883_v1  ;;  %v3355_v1 = vld [vmem:[%s3885_s19 + $0x1ac] ss:$16 sps:$4 sm:$0xff]   ;;  %s2914_s19 = sshll.u32 %s3523_s23, 6  ;;  %s4729_s23 = smov (!%p622_p12, %s3523_s23), 1 }
  0xb8   : > { %1689 = vmatpush1.bf16.msra.mxu0 %v3335_v48  ;;  %p615_p9 = scmp.lt.s32.totalorder %s2914_s19, 127  ;;  %s3131_s10 = sshll.u32 %s4729_s23, 7 }
  0xb9   : > { %1762 = vmatpush1.bf16.msra.mxu1 %v3338_v49  ;;  %1690 = vmatprep.subr.bf16.mxu0 %v3343_v50 }
  0xba   : > { %1763 = vmatprep.subr.bf16.mxu1 %v3346_v51  ;;  %s4725_s19 = smov (!%p615_p9, %s2914_s19), 127 }
  0xbb   : > { %s3130_s13 = sshll.u32 %s4725_s19, 3  ;;  %s4662_s19 = scalar_lea.vmem %s4717_s6, %s3131_s10 }
  0xbc   : > { %1691 = vmatpush2.bf16.msra.mxu0 %v3341_v52  ;;  %s4121_s16 = scalar_lea.vmem %s4715_s4, %s3130_s13 }
  0xbd   : > { %1764 = vmatpush2.bf16.msra.mxu1 %v3344_v53  ;;  %1692 = vmatprep.subr.bf16.mxu0 %v3349_v54  ;;  %v3403_v30 = vld [vmem:[%s4121_s16 + $0x54] ss:$8 sps:$4 sm:$0xff]   ;;  %v3401_v32 = vld [vmem:[%s4121_s16 + $0x50] ss:$8 sps:$4 sm:$0xff]   ;;  %v3409_v38 = vld [vmem:[%s4121_s16 + $0x44] ss:$8 sps:$4 sm:$0xff]  }
  0xbe   : > { %1765 = vmatprep.subr.bf16.mxu1 %v3352_v55  ;;  %v3404_v33 = vld [vmem:[%s4121_s16 + $0x150] ss:$8 sps:$4 sm:$0xff]   ;;  %v3412_v39 = vld [vmem:[%s4121_s16 + $0x144] ss:$8 sps:$4 sm:$0xff]   ;;  %v3407_v40 = vld [vmem:[%s4121_s16 + $0x40] ss:$8 sps:$4 sm:$0xff]  }
  0xbf   : > { %v3410_v41 = vld [vmem:[%s4121_s16 + $0x140] ss:$8 sps:$4 sm:$0xff]   ;;  %v3415_v46 = vld [vmem:[%s4121_s16 + $0x34] ss:$8 sps:$4 sm:$0xff]   ;;  %v3413_v48 = vld [vmem:[%s4121_s16 + $0x30] ss:$8 sps:$4 sm:$0xff]  }
  0xc0   : > { %1693 = vmatpush2.bf16.msra.mxu0 %v3347_v56  ;;  %v3418_v47 = vld [vmem:[%s4121_s16 + $0x134] ss:$8 sps:$4 sm:$0xff]   ;;  %v3416_v49 = vld [vmem:[%s4121_s16 + $0x130] ss:$8 sps:$4 sm:$0xff]   ;;  %v3421_v54 = vld [vmem:[%s4121_s16 + $0x24] ss:$8 sps:$4 sm:$0xff]  }
  0xc1   : > { %1766 = vmatpush2.bf16.msra.mxu1 %v3350_v0  ;;  %1694 = vmatprep.subr.bf16.mxu0 %v3355_v1  ;;  %v3424_v55 = vld [vmem:[%s4121_s16 + $0x124] ss:$8 sps:$4 sm:$0xff]   ;;  %v3419_v56 = vld [vmem:[%s4121_s16 + $0x20] ss:$8 sps:$4 sm:$0xff]  }
  0xc2   : > { %1767 = vmatprep.subr.bf16.mxu1 %v3358_v57  ;;  %v3422_v0 = vld [vmem:[%s4121_s16 + $0x120] ss:$8 sps:$4 sm:$0xff]  }
  0xc4   : > { %1695 = vmatpush2.bf16.msra.mxu0 %v3353_v58 }
  0xc5   : > { %1768 = vmatpush2.bf16.msra.mxu1 %v3356_v59  ;;  %1696 = vmatprep.subr.bf16.mxu0 %v3361_v60  ;;  %v3427_v60 = vld [vmem:[%s4121_s16 + $0x14] ss:$8 sps:$4 sm:$0xff]  }
  0xc6   : > { %1769 = vmatprep.subr.bf16.mxu1 %v3364_v61  ;;  %v3430_v61 = vld [vmem:[%s4121_s16 + $0x114] ss:$8 sps:$4 sm:$0xff]  }
  0xc8   : > { %1697 = vmatpush2.bf16.msra.mxu0 %v3359_v62  ;;  %v3425_v62 = vld [vmem:[%s4121_s16 + $0x10] ss:$8 sps:$4 sm:$0xff]  }
  0xc9   : > { %1770 = vmatpush2.bf16.msra.mxu1 %v3362_v63  ;;  %1698 = vmatprep.subr.bf16.mxu0 %v3367_v2  ;;  %v3428_v63 = vld [vmem:[%s4121_s16 + $0x110] ss:$8 sps:$4 sm:$0xff]  }
  0xca   : > { %1771 = vmatprep.subr.bf16.mxu1 %v3370_v3 }
  0xcc   : > { %1699 = vmatpush2.bf16.msra.mxu0 %v3365_v4  ;;  %v3433_v4 = vld [vmem:[%s4121_s16 + $0x4] ss:$8 sps:$4 sm:$0xff]  }
  0xcd   : > { %1772 = vmatpush2.bf16.msra.mxu1 %v3368_v6  ;;  %1700 = vmatprep.subr.bf16.mxu0 %v3373_v8  ;;  %v3436_v6 = vld [vmem:[%s4121_s16 + $0x104] ss:$8 sps:$4 sm:$0xff]  }
  0xce   : > { %1773 = vmatprep.subr.bf16.mxu1 %v3376_v9 }
  0xd0   : > { %1701 = vmatpush2.bf16.msra.mxu0 %v3371_v10  ;;  %v3431_v10 = vld [vmem:[%s4121_s16] ss:$8 sps:$4 sm:$0xff]  }
  0xd1   : > { %1774 = vmatpush2.bf16.msra.mxu1 %v3374_v11  ;;  %1702 = vmatprep.subr.bf16.mxu0 %v3379_v14  ;;  %v3434_v11 = vld [vmem:[%s4121_s16 + $0x100] ss:$8 sps:$4 sm:$0xff]   ;;  %v3439_v14 = vld [vmem:[%s4121_s16 + $0xf4] ss:$8 sps:$4 sm:$0xff]  }
  0xd2   : > { %1775 = vmatprep.subr.bf16.mxu1 %v3382_v15  ;;  %v3442_v15 = vld [vmem:[%s4121_s16 + $0x1f4] ss:$8 sps:$4 sm:$0xff]  }
  0xd4   : > { %1703 = vmatpush2.bf16.msra.mxu0 %v3377_v16 }
  0xd5   : > { %1776 = vmatpush2.bf16.msra.mxu1 %v3380_v18  ;;  %1704 = vmatprep.subr.bf16.mxu0 %v3385_v20  ;;  %v3437_v20 = vld [vmem:[%s4121_s16 + $0xf0] ss:$8 sps:$4 sm:$0xff]  }
  0xd6   : > { %1777 = vmatprep.subr.bf16.mxu1 %v3388_v21  ;;  %v3440_v21 = vld [vmem:[%s4121_s16 + $0x1f0] ss:$8 sps:$4 sm:$0xff]  }
  0xd8   : > { %1705 = vmatpush2.bf16.msra.mxu0 %v3383_v22 }
  0xd9   : > { %1778 = vmatpush2.bf16.msra.mxu1 %v3386_v23  ;;  %v3445_v23 = vld [vmem:[%s4121_s16 + $0xe4] ss:$8 sps:$4 sm:$0xff]  }
  0xdb   : > { %1707 = vmatmul.mubr.bf16.vlgmr.msra.gmra.mxu0 %v3957_v5  ;;  %v3391_v5 = vld [vmem:[%s4121_s16 + $0x74] ss:$8 sps:$4 sm:$0xff]  }
  0xdc   : > { %1780 = vmatmul.mubr.bf16.vlgmr.msra.gmra.mxu1 %v3963_v7  ;;  %1716 = vmatprep.mubr.bf16.mxu0 %v3972_v12  ;;  %v3389_v7 = vld [vmem:[%s4121_s16 + $0x70] ss:$8 sps:$4 sm:$0xff]  }
  0xdd   : > { %1789 = vmatprep.mubr.bf16.mxu1 %v3977_v13  ;;  %2590 = vmatprep.subr.bf16.mxu0 %v3391_v5  ;;  %v3392_v12 = vld [vmem:[%s4121_s16 + $0x170] ss:$8 sps:$4 sm:$0xff]   ;;  %v3394_v13 = vld [vmem:[%s4121_s16 + $0x174] ss:$8 sps:$4 sm:$0xff]   ;;  %v3448_v5 = vld [vmem:[%s4121_s16 + $0x1e4] ss:$8 sps:$4 sm:$0xff]  }
  0xde   : > { %2591 = vmatpush1.bf16.msra.mxu0 %v3389_v7  ;;  %2663 = vmatprep.subr.bf16.mxu1 %v3394_v13 }
  0xdf   : > { %2664 = vmatpush1.bf16.msra.mxu1 %v3392_v12 }
  0xe3   : > { %1717 = vmatmul.mubr.bf16.gmra.mxu0 %v3987_v17  ;;  %v3397_v17 = vld [vmem:[%s4121_s16 + $0x64] ss:$8 sps:$4 sm:$0xff]  }
  0xe4   : > { %1790 = vmatmul.mubr.bf16.gmra.mxu1 %v3995_v19  ;;  %1726 = vmatprep.mubr.bf16.mxu0 %v4004_v24  ;;  %v3400_v19 = vld [vmem:[%s4121_s16 + $0x164] ss:$8 sps:$4 sm:$0xff]   ;;  %v3395_v24 = vld [vmem:[%s4121_s16 + $0x60] ss:$8 sps:$4 sm:$0xff]  }
  0xe5   : > { %1799 = vmatprep.mubr.bf16.mxu1 %v4009_v25  ;;  %v3398_v25 = vld [vmem:[%s4121_s16 + $0x160] ss:$8 sps:$4 sm:$0xff]   ;;  %2592 = vmatprep.subr.bf16.mxu0 %v3397_v17 }
  0xe6   : > { %2665 = vmatprep.subr.bf16.mxu1 %v3400_v19  ;;  %2593 = vmatpush1.bf16.msra.mxu0 %v3395_v24  ;;  %v3443_v17 = vld [vmem:[%s4121_s16 + $0xe0] ss:$8 sps:$4 sm:$0xff]  }
  0xe7   : > { %2666 = vmatpush1.bf16.msra.mxu1 %v3398_v25  ;;  %2594 = vmatprep.subr.bf16.mxu0 %v3403_v30  ;;  %v3446_v19 = vld [vmem:[%s4121_s16 + $0x1e0] ss:$8 sps:$4 sm:$0xff]  }
  0xea   : > { %2595 = vmatpush1.bf16.msra.mxu0 %v3401_v32  ;;  %v3451_v32 = vld [vmem:[%s4121_s16 + $0xd4] ss:$8 sps:$4 sm:$0xff]  }
  0xeb   : > { %1727 = vmatmul.mubr.bf16.gmra.mxu0 %v4019_v29  ;;  %2596 = vmatprep.subr.bf16.mxu0 %v3409_v38 }
  0xec   : > { %1800 = vmatmul.mubr.bf16.gmra.mxu1 %v4027_v31  ;;  %1736 = vmatprep.mubr.bf16.mxu0 %v4036_v36  ;;  %v3406_v31 = vld [vmem:[%s4121_s16 + $0x154] ss:$8 sps:$4 sm:$0xff]  }
  0xed   : > { %1809 = vmatprep.mubr.bf16.mxu1 %v4041_v37  ;;  %2667 = vmatprep.subr.bf16.mxu1 %v3406_v31 }
  0xee   : > { %2668 = vmatpush1.bf16.msra.mxu1 %v3404_v33  ;;  %2597 = vmatpush1.bf16.msra.mxu0 %v3407_v40  ;;  %v3454_v33 = vld [vmem:[%s4121_s16 + $0x1d4] ss:$8 sps:$4 sm:$0xff]  }
  0xef   : > { %2669 = vmatprep.subr.bf16.mxu1 %v3412_v39  ;;  %2598 = vmatprep.subr.bf16.mxu0 %v3415_v46 }
  0xf2   : > { %2670 = vmatpush1.bf16.msra.mxu1 %v3410_v41  ;;  %2599 = vmatpush1.bf16.msra.mxu0 %v3413_v48 }
  0xf3   : > { %1737 = vmatmul.mubr.bf16.gmra.mxu0 %v4054_v42  ;;  %2671 = vmatprep.subr.bf16.mxu1 %v3418_v47 }
  0xf4   : > { %1810 = vmatmul.mubr.bf16.gmra.mxu1 %v4059_v43  ;;  %2600 = vmatprep.subr.bf16.mxu0 %v3421_v54 }
  0xf6   : > { %2672 = vmatpush1.bf16.msra.mxu1 %v3416_v49  ;;  %2601 = vmatpush1.bf16.msra.mxu0 %v3419_v56  ;;  %v3455_v49 = vld [vmem:[%s4121_s16 + $0xc0] ss:$8 sps:$4 sm:$0xff]  }
  0xf7   : > { %2673 = vmatprep.subr.bf16.mxu1 %v3424_v55  ;;  %2602 = vmatprep.subr.bf16.mxu0 %v3427_v60 }
  0xfa   : > { %2674 = vmatpush1.bf16.msra.mxu1 %v3422_v0  ;;  %2603 = vmatpush1.bf16.msra.mxu0 %v3425_v62 }
  0xfb   : > { %2675 = vmatprep.subr.bf16.mxu1 %v3430_v61  ;;  %2604 = vmatprep.subr.bf16.mxu0 %v3433_v4  ;;  %v3472_v4 = vld [vmem:[%s4121_s16 + $0x1a4] ss:$8 sps:$4 sm:$0xff]  }
  0xfe   : > { %2676 = vmatpush1.bf16.msra.mxu1 %v3428_v63  ;;  %2605 = vmatpush1.bf16.msra.mxu0 %v3431_v10  ;;  %v3475_v10 = vld [vmem:[%s4121_s16 + $0x94] ss:$8 sps:$4 sm:$0xff]  }
  0xff   : > { %2677 = vmatprep.subr.bf16.mxu1 %v3436_v6  ;;  %2606 = vmatprep.subr.bf16.mxu0 %v3439_v14  ;;  %v3467_v6 = vld [vmem:[%s4121_s16 + $0xa0] ss:$8 sps:$4 sm:$0xff]   ;;  %v3473_v14 = vld [vmem:[%s4121_s16 + $0x90] ss:$8 sps:$4 sm:$0xff]  }
 0x102   : > { %2678 = vmatpush1.bf16.msra.mxu1 %v3434_v11  ;;  %2607 = vmatpush2.bf16.msra.mxu0 %v3437_v20  ;;  %v3481_v20 = vld [vmem:[%s4121_s16 + $0x84] ss:$8 sps:$4 sm:$0xff]  }
 0x103   : > { %2679 = vmatprep.subr.bf16.mxu1 %v3442_v15  ;;  %2608 = vmatprep.subr.bf16.mxu0 %v3445_v23  ;;  %v3478_v15 = vld [vmem:[%s4121_s16 + $0x194] ss:$8 sps:$4 sm:$0xff]  }
 0x106   : > { %2680 = vmatpush2.bf16.msra.mxu1 %v3440_v21  ;;  %2609 = vmatpush2.bf16.msra.mxu0 %v3443_v17  ;;  %v3484_v21 = vld [vmem:[%s4121_s16 + $0x184] ss:$8 sps:$4 sm:$0xff]  }
 0x107   : > { %2681 = vmatprep.subr.bf16.mxu1 %v3448_v5  ;;  %2610 = vmatprep.subr.bf16.mxu0 %v3451_v32  ;;  %v3479_v5 = vld [vmem:[%s4121_s16 + $0x80] ss:$8 sps:$4 sm:$0xff]  }
 0x10a   : > { %2682 = vmatpush2.bf16.msra.mxu1 %v3446_v19 }
 0x10b   : > { %2683 = vmatprep.subr.bf16.mxu1 %v3454_v33 }
 0x15b   : > { %v4131_v26 = vpop.f32.mrf.mxu0 }
 0x15c   : > { %v4133_v27 = vpop.f32.mrf.mxu1 }
 0x15d   : > { %v4135_v28 = vpop.f32.mrf.mxu0  ;;  %v4217_v30 = vadd.f32 %v4133_v27, %v4131_v26 }
 0x15e   : > { %v4137_v29 = vpop.f32.mrf.mxu1 }
 0x15f   : > { %v4143_v34 = vpop.f32.mrf.mxu0  ;;  %v4209_v24 = vadd.f32 %v4137_v29, %v4135_v28 }
 0x160   : > { %v4145_v35 = vpop.f32.mrf.mxu1 }
 0x161   : > { %v4147_v36 = vpop.f32.mrf.mxu0  ;;  %v4203_v7 = vadd.f32 %v4145_v35, %v4143_v34 }
 0x162   : > { %v4149_v37 = vpop.f32.mrf.mxu1 }
 0x163   : > { %v4155_v42 = vpop.f32.mrf.mxu0  ;;  %v4197_v22 = vadd.f32 %v4149_v37, %v4147_v36  ;;  %v1820_v34 = vadd.f32 %v4203_v7, %v4217_v30  ;;  %v3449_v36 = vld [vmem:[%s4121_s16 + $0xd0] ss:$8 sps:$4 sm:$0xff]  }
 0x164   : > { %v4157_v43 = vpop.f32.mrf.mxu1  ;;  %v3452_v37 = vld [vmem:[%s4121_s16 + $0x1d0] ss:$8 sps:$4 sm:$0xff]   ;;  %2611 = vmatpush2.bf16.msra.mxu0 %v3449_v36 }
 0x165   : > { %v4159_v44 = vpop.f32.mrf.mxu0  ;;  %v4221_v31 = vadd.f32 %v4157_v43, %v4155_v42  ;;  %v1833_v28 = vadd.f32 %v4197_v22, %v4209_v24  ;;  %2684 = vmatpush2.bf16.msra.mxu1 %v3452_v37 }
 0x166   : > { %v4161_v45 = vpop.f32.mrf.mxu1 }
 0x167   : > { %v4167_v50 = vpop.f32.mrf.mxu0  ;;  %v4213_v25 = vadd.f32 %v4161_v45, %v4159_v44  ;;  %v1821_v40 = vadd.f32 %v1820_v34, %v4221_v31  ;;  %v3457_v44 = vld [vmem:[%s4121_s16 + $0xc4] ss:$8 sps:$4 sm:$0xff]  }
 0x168   : > { %v4169_v51 = vpop.f32.mrf.mxu1  ;;  %v3460_v45 = vld [vmem:[%s4121_s16 + $0x1c4] ss:$8 sps:$4 sm:$0xff]   ;;  %2612 = vmatprep.subr.bf16.mxu0 %v3457_v44 }
 0x169   : > { %v1578_v52 = vpop.f32.mrf.mxu0  ;;  %v4233_v26 = vadd.f32 %v4169_v51, %v4167_v50  ;;  %v1834_v38 = vadd.f32 %v1833_v28, %v4213_v25  ;;  %v3458_v50 = vld [vmem:[%s4121_s16 + $0x1c0] ss:$8 sps:$4 sm:$0xff]   ;;  %2685 = vmatprep.subr.bf16.mxu1 %v3460_v45  ;;  %2613 = vmatpush2.bf16.msra.mxu0 %v3455_v49 }
 0x16a   : > { %v1651_v53 = vpop.f32.mrf.mxu1  ;;  %2686 = vmatpush2.bf16.msra.mxu1 %v3458_v50 }
 0x16b   : > { %v4175_v1 = vpop.f32.mrf.mxu0  ;;  %v4225_v29 = vadd.f32 %v1651_v53, %v1578_v52  ;;  %v1822_v46 = vadd.f32 %v1821_v40, %v4233_v26 }
 0x16c   : > { %v4177_v57 = vpop.f32.mrf.mxu1 }
 0x16d   : > { %v1584_v58 = vpop.f32.mrf.mxu0  ;;  %v1835_v41 = vadd.f32 %v1834_v38, %v4225_v29  ;;  %v4244_v42 = vadd.f32 %v4177_v57, %v4175_v1  ;;  %v3463_v1 = vld [vmem:[%s4121_s16 + $0xb4] ss:$8 sps:$4 sm:$0xff]  }
 0x16e   : > { %v1657_v59 = vpop.f32.mrf.mxu1  ;;  %v3466_v57 = vld [vmem:[%s4121_s16 + $0x1b4] ss:$8 sps:$4 sm:$0xff]   ;;  %2614 = vmatprep.subr.bf16.mxu0 %v3463_v1 }
 0x16f   : > { %v4183_v2 = vpop.f32.mrf.mxu0  ;;  %v4238_v39 = vadd.f32 %v1657_v59, %v1584_v58  ;;  %v1823_v54 = vadd.f32 %v1822_v46, %v4244_v42  ;;  %v3461_v58 = vld [vmem:[%s4121_s16 + $0xb0] ss:$8 sps:$4 sm:$0xff]   ;;  %2687 = vmatprep.subr.bf16.mxu1 %v3466_v57 }
 0x170   : > { %v4185_v3 = vpop.f32.mrf.mxu1  ;;  %v3464_v59 = vld [vmem:[%s4121_s16 + $0x1b0] ss:$8 sps:$4 sm:$0xff]   ;;  %2615 = vmatpush2.bf16.msra.mxu0 %v3461_v58 }
 0x171   : > { %v1588_v8 = vpop.f32.mrf.mxu0  ;;  %v1836_v51 = vadd.f32 %v1835_v41, %v4238_v39  ;;  %v4256_v52 = vadd.f32 %v4185_v3, %v4183_v2  ;;  %v3469_v3 = vld [vmem:[%s4121_s16 + $0xa4] ss:$8 sps:$4 sm:$0xff]   ;;  %2688 = vmatpush2.bf16.msra.mxu1 %v3464_v59 }
 0x172   : > { %v1661_v9 = vpop.f32.mrf.mxu1  ;;  %2616 = vmatprep.subr.bf16.mxu0 %v3469_v3  ;;  %2689 = vmatprep.subr.bf16.mxu1 %v3472_v4 }
 0x173   : > { %v1592_v16 = vpop.f32.mrf.mxu0  ;;  %v4246_v43 = vadd.f32 %v1661_v9, %v1588_v8  ;;  %v1824_v60 = vadd.f32 %v1823_v54, %v4256_v52  ;;  %v3470_v8 = vld [vmem:[%s4121_s16 + $0x1a0] ss:$8 sps:$4 sm:$0xff]  }
 0x174   : > { %v1665_v18 = vpop.f32.mrf.mxu1  ;;  %2617 = vmatpush2.bf16.msra.mxu0 %v3467_v6 }
 0x175   : > { %v1594_v12 = vpop.f32.mrf.mxu0  ;;  %v1837_v55 = vadd.f32 %v1836_v51, %v4246_v43  ;;  %v4262_v56 = vadd.f32 %v1665_v18, %v1592_v16  ;;  %2690 = vmatpush2.bf16.msra.mxu1 %v3470_v8  ;;  %2618 = vmatprep.subr.bf16.mxu0 %v3475_v10  ;;  %v3476_v16 = vld [vmem:[%s4121_s16 + $0x190] ss:$8 sps:$4 sm:$0xff]  }
 0x176   : > { %v1667_v13 = vpop.f32.mrf.mxu1  ;;  %2691 = vmatprep.subr.bf16.mxu1 %v3478_v15 }
 0x177   : > { %v1596_v27 = vpop.f32.mrf.mxu0  ;;  %v4258_v53 = vadd.f32 %v1667_v13, %v1594_v12  ;;  %v1825_v63 = vadd.f32 %v1824_v60, %v4262_v56  ;;  %v3482_v12 = vld [vmem:[%s4121_s16 + $0x180] ss:$8 sps:$4 sm:$0xff]  }
 0x178   : > { %v1669_v35 = vpop.f32.mrf.mxu1  ;;  %2619 = vmatpush2.bf16.msra.mxu0 %v3473_v14 }
 0x179   : > { %v1598_v47 = vpop.f32.mrf.mxu0  ;;  %v1838_v61 = vadd.f32 %v1837_v55, %v4258_v53  ;;  %v4272_v62 = vadd.f32 %v1669_v35, %v1596_v27  ;;  %2692 = vmatpush2.bf16.msra.mxu1 %v3476_v16  ;;  %2620 = vmatprep.subr.bf16.mxu0 %v3481_v20 }
 0x17a   : > { %v1671_v48 = vpop.f32.mrf.mxu1  ;;  %2693 = vmatprep.subr.bf16.mxu1 %v3484_v21 }
 0x17b   : > { %v4264_v0 = vadd.f32 %v1671_v48, %v1598_v47  ;;  %v1826_v9 = vadd.f32 %v1825_v63, %v4272_v62 }
 0x17c   : > { %2621 = vmatpush2.bf16.msra.mxu0 %v3479_v5 }
 0x17d   : > { %v1839_v2 = vadd.f32 %v1838_v61, %v4264_v0  ;;  %v1827_v18 = vrot.slane %v1826_v9, 4  ;;  %2694 = vmatpush2.bf16.msra.mxu1 %v3482_v12 }
 0x17f   : > { %v1840_v11 = vrot.slane %v1839_v2, 4  ;;  %v1828_v13 = vadd.f32 %v1827_v18, %v1826_v9 }
 0x181   : > { %v1841_v23 = vadd.f32 %v1840_v11, %v1839_v2  ;;  %v1829_v19 = vrot.slane %v1828_v13, 2 }
 0x183   : > { %v1842_v17 = vrot.slane %v1841_v23, 2  ;;  %v1830_v32 = vadd.f32 %v1829_v19, %v1828_v13 }
 0x185   : > { %v1843_v28 = vadd.f32 %v1842_v17, %v1841_v23  ;;  %v1831_v37 = vrot.slane %v1830_v32, 1 }
 0x187   : > { %v1844_v27 = vrot.slane %v1843_v28, 1  ;;  %v1832_v46 = vadd.f32 %v1831_v37, %v1830_v32 }
 0x189   : > { %v1845_v41 = vadd.f32 %v1844_v27, %v1843_v28  ;;  %v4291_v54 = vmul.f32 0.015625, %v1832_v46 }
 0x18b   : > { %v4289_v49 = vmul.f32 0.015625, %v1845_v41  ;;  %v4305_v63 = vsub.f32 %v4217_v30, %v4291_v54  ;;  %v4309_v2 = vsub.f32 %v4203_v7, %v4291_v54  ;;  %v4346_v19 = vsub.f32 %v4221_v31, %v4291_v54 }
 0x18d   : > { %v4295_v57 = vsub.f32 %v4209_v24, %v4289_v49  ;;  %v4299_v58 = vsub.f32 %v4197_v22, %v4289_v49  ;;  %v1908_v16 = vmul.f32 %v4305_v63, %v4305_v63  ;;  %v1912_v18 = vmul.f32 %v4309_v2, %v4309_v2 }
 0x18e   : > { %v4335_v20 = vsub.f32 %v4213_v25, %v4289_v49  ;;  %v4356_v37 = vsub.f32 %v4225_v29, %v4289_v49  ;;  %v1916_v29 = vmul.f32 %v4346_v19, %v4346_v19 }
 0x18f   : > { %v1909_v8 = vmul.f32 %v4295_v57, %v4295_v57  ;;  %v1913_v9 = vmul.f32 %v4299_v58, %v4299_v58 }
 0x190   : > { %v1917_v31 = vmul.f32 %v4335_v20, %v4335_v20 }
 0x191   : > { %v1953_v28 = vadd.f32 %v1913_v9, %v1909_v8 }
 0x19b   : > { %v1708_v33 = vpop.f32.mrf.mxu0 }
 0x19c   : > { %v1781_v34 = vpop.f32.mrf.mxu1 }
 0x19d   : > { %v1710_v35 = vpop.f32.mrf.mxu0  ;;  %v4311_v24 = vadd.f32 %v1781_v34, %v1708_v33 }
 0x19e   : > { %v1783_v36 = vpop.f32.mrf.mxu1 }
 0x19f   : > { %v1712_v38 = vpop.f32.mrf.mxu0  ;;  %v4321_v11 = vadd.f32 %v1783_v36, %v1710_v35  ;;  %v1940_v36 = vadd.f32 %v1912_v18, %v1908_v16 }
 0x1a0   : > { %v1785_v40 = vpop.f32.mrf.mxu1 }
 0x1a1   : > { %v1714_v44 = vpop.f32.mrf.mxu0  ;;  %v4301_v61 = vadd.f32 %v1785_v40, %v1712_v38 }
 0x1a2   : > { %v1787_v45 = vpop.f32.mrf.mxu1 }
 0x1a3   : > { %v1718_v47 = vpop.f32.mrf.mxu0  ;;  %v4313_v6 = vadd.f32 %v1787_v45, %v1714_v44  ;;  %v1846_v7 = vadd.f32 %v4301_v61, %v4311_v24 }
 0x1a4   : > { %v1791_v48 = vpop.f32.mrf.mxu1 }
 0x1a5   : > { %v1720_v50 = vpop.f32.mrf.mxu0  ;;  %v4315_v22 = vadd.f32 %v1791_v48, %v1718_v47  ;;  %v1859_v5 = vadd.f32 %v4313_v6, %v4321_v11  ;;  %v4368_v47 = vsub.f32 %v4233_v26, %v4291_v54  ;;  %v1954_v48 = vadd.f32 %v1953_v28, %v1917_v31 }
 0x1a6   : > { %v1793_v51 = vpop.f32.mrf.mxu1  ;;  %v1921_v26 = vmul.f32 %v4356_v37, %v4356_v37 }
 0x1a7   : > { %v1722_v55 = vpop.f32.mrf.mxu0  ;;  %v4325_v14 = vadd.f32 %v1793_v51, %v1720_v50  ;;  %v1847_v12 = vadd.f32 %v1846_v7, %v4315_v22  ;;  %v4388_v7 = vsub.f32 %v4244_v42, %v4291_v54  ;;  %v1920_v16 = vmul.f32 %v4368_v47, %v4368_v47 }
 0x1a8   : > { %v1795_v1 = vpop.f32.mrf.mxu1 }
 0x1a9   : > { %v1724_v59 = vpop.f32.mrf.mxu0  ;;  %v4327_v15 = vadd.f32 %v1795_v1, %v1722_v55  ;;  %v1860_v25 = vadd.f32 %v1859_v5, %v4325_v14 }
 0x1aa   : > { %v1797_v60 = vpop.f32.mrf.mxu1 }
 0x1ab   : > { %v1728_v3 = vpop.f32.mrf.mxu0  ;;  %v4340_v13 = vadd.f32 %v1797_v60, %v1724_v59  ;;  %v1848_v34 = vadd.f32 %v1847_v12, %v4327_v15  ;;  %v1941_v60 = vadd.f32 %v1940_v36, %v1916_v29  ;;  %v1924_v36 = vmul.f32 %v4388_v7, %v4388_v7 }
 0x1ac   : > { %v1801_v4 = vpop.f32.mrf.mxu1 }
 0x1ad   : > { %v1730_v30 = vpop.f32.mrf.mxu0  ;;  %v4342_v17 = vadd.f32 %v1801_v4, %v1728_v3  ;;  %v1861_v41 = vadd.f32 %v1860_v25, %v4340_v13  ;;  %v4378_v3 = vsub.f32 %v4238_v39, %v4289_v49  ;;  %v1955_v39 = vadd.f32 %v1954_v48, %v1921_v26 }
 0x1ae   : > { %v1803_v10 = vpop.f32.mrf.mxu1  ;;  %v1942_v28 = vadd.f32 %v1941_v60, %v1920_v16 }
 0x1af   : > { %v1732_v21 = vpop.f32.mrf.mxu0  ;;  %v4350_v27 = vadd.f32 %v1803_v10, %v1730_v30  ;;  %v1849_v44 = vadd.f32 %v1848_v34, %v4342_v17  ;;  %v1925_v42 = vmul.f32 %v4378_v3, %v4378_v3  ;;  %v4405_v34 = vsub.f32 %v4256_v52, %v4291_v54 }
 0x1b0   : > { %v1805_v23 = vpop.f32.mrf.mxu1  ;;  %v4417_v52 = vsub.f32 %v4262_v56, %v4291_v54  ;;  %v4429_v56 = vsub.f32 %v4272_v62, %v4291_v54 }
 0x1b1   : > { %v1734_v32 = vpop.f32.mrf.mxu0  ;;  %v4352_v35 = vadd.f32 %v1805_v23, %v1732_v21  ;;  %v1862_v55 = vadd.f32 %v1861_v41, %v4350_v27  ;;  %v1956_v31 = vadd.f32 %v1955_v39, %v1925_v42  ;;  %v1943_v41 = vadd.f32 %v1942_v28, %v1924_v36 }
 0x1b2   : > { %v1807_v33 = vpop.f32.mrf.mxu1 }
 0x1b3   : > { %v1738_v38 = vpop.f32.mrf.mxu0  ;;  %v4362_v45 = vadd.f32 %v1807_v33, %v1734_v32  ;;  %v1850_v1 = vadd.f32 %v1849_v44, %v4352_v35  ;;  %v4398_v32 = vsub.f32 %v4246_v43, %v4289_v49  ;;  %v4411_v43 = vsub.f32 %v4258_v53, %v4289_v49 }
 0x1b4   : > { %v1811_v40 = vpop.f32.mrf.mxu1  ;;  %v4423_v53 = vsub.f32 %v4264_v0, %v4289_v49 }
 0x1b5   : > { %v4364_v46 = vadd.f32 %v1811_v40, %v1738_v38  ;;  %v1740_v50 = vpop.f32.mrf.mxu0  ;;  %v1863_v9 = vadd.f32 %v1862_v55, %v4362_v45  ;;  %v1929_v44 = vmul.f32 %v4398_v32, %v4398_v32  ;;  %v1933_v26 = vmul.f32 %v4411_v43, %v4411_v43 }
 0x1b6   : > { %v1813_v51 = vpop.f32.mrf.mxu1  ;;  %v1937_v0 = vmul.f32 %v4423_v53, %v4423_v53 }
 0x1b7   : > { %v4374_v59 = vadd.f32 %v1813_v51, %v1740_v50  ;;  %v1742_v4 = vpop.f32.mrf.mxu0  ;;  %v1851_v30 = vadd.f32 %v1850_v1, %v4364_v46  ;;  %v1928_v50 = vmul.f32 %v4405_v34, %v4405_v34  ;;  %v1957_v51 = vadd.f32 %v1956_v31, %v1929_v44 }
 0x1b8   : > { %v1815_v8 = vpop.f32.mrf.mxu1 }
 0x1b9   : > { %v4384_v10 = vadd.f32 %v1815_v8, %v1742_v4  ;;  %v1744_v18 = vpop.f32.mrf.mxu0  ;;  %v1864_v23 = vadd.f32 %v1863_v9, %v4374_v59  ;;  %v1944_v60 = vadd.f32 %v1943_v41, %v1928_v50  ;;  %v1932_v9 = vmul.f32 %v4417_v52, %v4417_v52 }
 0x1ba   : > { %v1817_v21 = vpop.f32.mrf.mxu1 }
 0x1bb   : > { %v1852_v5 = vadd.f32 %v1851_v30, %v4384_v10  ;;  %v4394_v12 = vadd.f32 %v1817_v21, %v1744_v18  ;;  %v1958_v30 = vadd.f32 %v1957_v51, %v1933_v26  ;;  %v1945_v18 = vadd.f32 %v1944_v60, %v1932_v9 }
 0x1bc   : > { %v1936_v21 = vmul.f32 %v4429_v56, %v4429_v56 }
 0x1bd   : > { %v1853_v33 = vrot.slane %v1852_v5, 4  ;;  %v1865_v25 = vadd.f32 %v1864_v23, %v4394_v12  ;;  %v1959_v23 = vadd.f32 %v1958_v30, %v1937_v0 }
 0x1be   : > { %v1946_v42 = vadd.f32 %v1945_v18, %v1936_v21 }
 0x1bf   : > { %v1854_v38 = vadd.f32 %v1853_v33, %v1852_v5  ;;  %v1866_v40 = vrot.slane %v1865_v25, 4  ;;  %v1960_v31 = vrot.slane %v1959_v23, 4 }
 0x1c1   : > { %v1855_v29 = vrot.slane %v1854_v38, 2  ;;  %v1867_v48 = vadd.f32 %v1866_v40, %v1865_v25  ;;  %v1947_v40 = vrot.slane %v1946_v42, 4  ;;  %v1961_v50 = vadd.f32 %v1960_v31, %v1959_v23 }
 0x1c3   : > { %v1856_v55 = vadd.f32 %v1855_v29, %v1854_v38  ;;  %v1868_v1 = vrot.slane %v1867_v48, 2  ;;  %v1948_v60 = vadd.f32 %v1947_v40, %v1946_v42  ;;  %v1962_v9 = vrot.slane %v1961_v50, 2 }
 0x1c5   : > { %v1857_v4 = vrot.slane %v1856_v55, 1  ;;  %v1869_v8 = vadd.f32 %v1868_v1, %v1867_v48  ;;  %v1949_v0 = vrot.slane %v1948_v60, 2  ;;  %v1963_v42 = vadd.f32 %v1962_v9, %v1961_v50 }
 0x1c7   : > { %v1858_v16 = vadd.f32 %v1857_v4, %v1856_v55  ;;  %v1870_v39 = vrot.slane %v1869_v8, 1 }
 0x1c9   : > { %v1874_v49 = vmul.f32 0.015625, %v1858_v16  ;;  %v1871_v28 = vadd.f32 %v1870_v39, %v1869_v8 }
 0x1cb   : > { %v4438_v5 = vsub.f32 %v4311_v24, %v1874_v49  ;;  %v4441_v62 = vsub.f32 %v4301_v61, %v1874_v49  ;;  %v4444_v54 = vsub.f32 %v4315_v22, %v1874_v49  ;;  %v4447_v33 = vsub.f32 %v4327_v15, %v1874_v49 }
 0x1cc   : > { %v4454_v24 = vsub.f32 %v4342_v17, %v1874_v49  ;;  %v1875_v38 = vmul.f32 0.015625, %v1871_v28  ;;  %v4459_v41 = vsub.f32 %v4352_v35, %v1874_v49  ;;  %v4473_v51 = vsub.f32 %v4364_v46, %v1874_v49 }
 0x1cd   : > { %v1910_v25 = vmul.f32 %v4438_v5, %v4438_v5  ;;  %v1914_v36 = vmul.f32 %v4441_v62, %v4441_v62  ;;  %v1918_v61 = vmul.f32 %v4444_v54, %v4444_v54  ;;  %v1922_v15 = vmul.f32 %v4447_v33, %v4447_v33 }
 0x1ce   : > { %v4464_v29 = vsub.f32 %v4321_v11, %v1875_v38  ;;  %v4467_v48 = vsub.f32 %v4313_v6, %v1875_v38  ;;  %v4470_v17 = vsub.f32 %v4325_v14, %v1875_v38  ;;  %v1926_v35 = vmul.f32 %v4454_v24, %v4454_v24 }
 0x1cf   : > { %v1966_v22 = vadd.f32 %v1914_v36, %v1910_v25  ;;  %v4478_v1 = vsub.f32 %v4340_v13, %v1875_v38  ;;  %v4485_v14 = vsub.f32 %v4384_v10, %v1874_v49  ;;  %v1930_v46 = vmul.f32 %v4459_v41, %v4459_v41 }
 0x1d0   : > { %v1911_v11 = vmul.f32 %v4464_v29, %v4464_v29  ;;  %v1915_v6 = vmul.f32 %v4467_v48, %v4467_v48  ;;  %v4490_v4 = vsub.f32 %v4350_v27, %v1875_v38  ;;  %v1919_v13 = vmul.f32 %v4470_v17, %v4470_v17 }
 0x1d1   : > { %v1967_v44 = vadd.f32 %v1966_v22, %v1918_v61  ;;  %v1934_v30 = vmul.f32 %v4473_v51, %v4473_v51  ;;  %v4497_v39 = vsub.f32 %v4362_v45, %v1875_v38  ;;  %v1923_v10 = vmul.f32 %v4478_v1, %v4478_v1 }
 0x1d2   : > { %v1979_v8 = vadd.f32 %v1915_v6, %v1911_v11  ;;  %v1938_v27 = vmul.f32 %v4485_v14, %v4485_v14  ;;  %v4504_v21 = vsub.f32 %v4374_v59, %v1875_v38  ;;  %v1927_v23 = vmul.f32 %v4490_v4, %v4490_v4 }
 0x1d3   : > { %v1968_v55 = vadd.f32 %v1967_v44, %v1922_v15  ;;  %v4509_v45 = vsub.f32 %v4394_v12, %v1875_v38  ;;  %v1931_v36 = vmul.f32 %v4497_v39, %v4497_v39  ;;  %v1950_v61 = vadd.f32 %v1949_v0, %v1948_v60 }
 0x1d4   : > { %v1980_v18 = vadd.f32 %v1979_v8, %v1919_v13  ;;  %v1935_v40 = vmul.f32 %v4504_v21, %v4504_v21  ;;  %v1964_v15 = vrot.slane %v1963_v42, 1 }
 0x1d5   : > { %v1969_v26 = vadd.f32 %v1968_v55, %v1926_v35  ;;  %v1939_v35 = vmul.f32 %v4509_v45, %v4509_v45  ;;  %v1951_v55 = vrot.slane %v1950_v61, 1 }
 0x1d6   : > { %v1981_v28 = vadd.f32 %v1980_v18, %v1923_v10  ;;  %v1965_v38 = vadd.f32 %v1964_v15, %v1963_v42 }
 0x1d7   : > { %v1970_v16 = vadd.f32 %v1969_v26, %v1930_v46  ;;  %v1952_v26 = vadd.f32 %v1951_v55, %v1950_v61 }
 0x1d8   : > { %v1982_v31 = vadd.f32 %v1981_v28, %v1927_v23  ;;  %v1993_v8 = vmul.f32 0.015625, %v1965_v38 }
 0x1d9   : > { %v1971_v49 = vadd.f32 %v1970_v16, %v1934_v30  ;;  %v1992_v16 = vmul.f32 0.015625, %v1952_v26  ;;  %v1996_v26 = vld [vmem:[%s603_s21] sm:$0xf] }
 0x1da   : > { %v1983_v59 = vadd.f32 %v1982_v31, %v1931_v36  ;;  %v1998_v0 = vadd.f32 1e-05, %v1993_v8  ;;  %v638_v36 = vlaneseq  ;;  %v3533_v31 = vmov 1966171168  }
 0x1db   : > { %v1972_v25 = vadd.f32 %v1971_v49, %v1938_v27  ;;  %v1997_v49 = vadd.f32 1e-05, %v1992_v16  ;;  %v2012_v61 = vunpack.c.l.s4 %v3533_v31 }
 0x1dc   : > { %v1984_v50 = vadd.f32 %v1983_v59, %v1935_v40  ;;  %3485 = vrsqrt.f32 %v1998_v0 }
 0x1dd   : > { %v1973_v22 = vrot.slane %v1972_v25, 4  ;;  %3487 = vrsqrt.f32 %v1997_v49  ;;  %v2013_v40 = vunpack.c.0.s8 %v2012_v61 }
 0x1de   : > { %v1985_v12 = vadd.f32 %v1984_v50, %v1939_v35 }
 0x1df   : > { %v1974_v44 = vadd.f32 %v1973_v22, %v1972_v25  ;;  %v639_v22 = vshrl.u32 %v638_v36, 7 }
 0x1e0   : > { %v1986_v46 = vrot.slane %v1985_v12, 4 }
 0x1e1   : > { %v1975_v11 = vrot.slane %v1974_v44, 2  ;;  %v2016_v50 = vsub.s32 %v2013_v40, %v639_v22  ;;  %v2047_v8 = vsub.s32 2, %v639_v22 }
 0x1e2   : > { %v1987_v60 = vadd.f32 %v1986_v46, %v1985_v12  ;;  %v4524_v46 = vsub.s32 0, %v639_v22 }
 0x1e3   : > { %v1976_v6 = vadd.f32 %v1975_v11, %v1974_v44 }
 0x1e4   : > { %v1988_v30 = vrot.slane %v1987_v60, 2 }
 0x1e5   : > { %v1977_v13 = vrot.slane %v1976_v6, 1 }
 0x1e6   : > { %v1989_v10 = vadd.f32 %v1988_v30, %v1987_v60  ;;  %v2035_v60 = vld [vmem:[%s610_s30] sm:$0xf]  ;;  %v4526_v30 = vsub.s32 1, %v639_v22 }
 0x1e7   : > { %v1978_v9 = vadd.f32 %v1977_v13, %v1976_v6 }
 0x1e8   : > { %v1990_v27 = vrot.slane %v1989_v10, 1 }
 0x1e9   : > { %v1994_v18 = vmul.f32 0.015625, %v1978_v9  ;;  %v3486_v59 = vpop.eup %3485  ;;  %v2051_v9 = vsub.s32 3, %v639_v22 }
 0x1ea   : > { %v1991_v23 = vadd.f32 %v1990_v27, %v1989_v10  ;;  %v3488_v15 = vpop.eup %3487  ;;  %v4529_v10 = vrot.slane %v2035_v60, %v4526_v30 }
 0x1eb   : > { %v1999_v28 = vadd.f32 1e-05, %v1994_v18  ;;  %v2009_v35 = vcombine.low %v3488_v15, %v3486_v59  ;;  %v4531_v18 = vrot.slane %v2035_v60, %v2051_v9 }
 0x1ec   : > { %v1995_v25 = vmul.f32 0.015625, %v1991_v23 }
 0x1ed   : > { %3489 = vrsqrt.f32 %v1999_v28  ;;  %v2017_v12 = vrot.slane %v2009_v35, %v2016_v50  ;;  %v4544_v28 = vrot.slane %v2035_v60, %v4524_v46 }
 0x1ee   : > { %v2000_v42 = vadd.f32 1e-05, %v1995_v25  ;;  %v4546_v25 = vrot.slane %v2035_v60, %v2047_v8 }
 0x1f0   : > { %3491 = vrsqrt.f32 %v2000_v42 }
 0x1fa   : > { %v3490_v44 = vpop.eup %3489 }
 0x1fd   : > { %v3492_v55 = vpop.eup %3491 }
 0x1fe   : > { %v2010_v11 = vcombine.low %v3490_v44, %v3492_v55 }
 0x200   : > { %v2024_v38 = vrot.slane %v2010_v11, %v2016_v50 }
 0x202   : > { %v2025_v6 = vcombine.low %v2017_v12, %v2024_v38 }
 0x204   : > { %v2032_v13 = vrot.slane %v2025_v6, %v2016_v50 }
 0x206   : > { %v2034_v16 = vmul.f32 %v2032_v13, %v1996_v26 }
 0x208   : > { %v4534_v0 = vrot.slane %v2034_v16, %v4524_v46  ;;  %v4536_v27 = vrot.slane %v2034_v16, %v2047_v8  ;;  %v4538_v49 = vrot.slane %v2034_v16, %v2051_v9  ;;  %v4541_v23 = vrot.slane %v2034_v16, %v4526_v30 }
 0x20a   : > { %v4550_v42 = vmul.f32 %v4538_v49, %v4509_v45  ;;  %v2058_v36 = vmul.f32 %v4541_v23, %v4295_v57  ;;  %v2062_v31 = vmul.f32 %v4541_v23, %v4299_v58  ;;  %v2060_v61 = vmul.f32 %v4538_v49, %v4464_v29 }
 0x20b   : > { %v2064_v22 = vmul.f32 %v4538_v49, %v4467_v48  ;;  %v2057_v40 = vmul.f32 %v4534_v0, %v4305_v63  ;;  %v2061_v59 = vmul.f32 %v4534_v0, %v4309_v2  ;;  %v2059_v45 = vmul.f32 %v4536_v27, %v4438_v5 }
 0x20c   : > { %v2111_v57 = vadd.f32 %v4529_v10, %v2058_v36  ;;  %v2115_v15 = vadd.f32 %v4529_v10, %v2062_v31  ;;  %v2113_v58 = vadd.f32 %v4531_v18, %v2060_v61  ;;  %v2063_v29 = vmul.f32 %v4536_v27, %v4441_v62 }
 0x20d   : > { %v2117_v48 = vadd.f32 %v4531_v18, %v2064_v22  ;;  %v2110_v44 = vadd.f32 %v4544_v28, %v2057_v40  ;;  %v2114_v63 = vadd.f32 %v4544_v28, %v2061_v59  ;;  %v2112_v2 = vadd.f32 %v4546_v25, %v2059_v45 }
 0x20e   : > { %v2143_v35 = vmax.f32 %v2111_v57, 0.0  ;;  %v2147_v50 = vmax.f32 %v2115_v15, 0.0  ;;  %v2145_v5 = vmax.f32 %v2113_v58, 0.0  ;;  %v2116_v55 = vadd.f32 %v4546_v25, %v2063_v29 }
 0x20f   : > { %v2149_v11 = vmax.f32 %v2117_v48, 0.0  ;;  %v2142_v12 = vmax.f32 %v2110_v44, 0.0  ;;  %v2146_v38 = vmax.f32 %v2114_v63, 0.0  ;;  %v2144_v6 = vmax.f32 %v2112_v2, 0.0 }
 0x210   : > { %v2191_v26 = vpack.c.bf16 %v2147_v50, %v2143_v35  ;;  %v2148_v13 = vmax.f32 %v2116_v55, 0.0  ;;  %v2066_v62 = vmul.f32 %v4541_v23, %v4335_v20  ;;  %v2070_v60 = vmul.f32 %v4541_v23, %v4356_v37 }
 0x211   : > { %v2193_v8 = vpack.c.bf16 %v2149_v11, %v2145_v5  ;;  %v2190_v9 = vpack.c.bf16 %v2146_v38, %v2142_v12  ;;  %v2068_v16 = vmul.f32 %v4538_v49, %v4470_v17  ;;  %v2072_v36 = vmul.f32 %v4538_v49, %v4478_v1 }
 0x212   : > { %2622 = vmatprep.mubr.bf16.mxu0 %v2191_v26  ;;  %v2192_v31 = vpack.c.bf16 %v2148_v13, %v2144_v6  ;;  %v2119_v61 = vadd.f32 %v4529_v10, %v2066_v62  ;;  %v2123_v22 = vadd.f32 %v4529_v10, %v2070_v60  ;;  %v2065_v20 = vmul.f32 %v4534_v0, %v4346_v19 }
 0x213   : > { %2695 = vmatprep.mubr.bf16.mxu1 %v2193_v8  ;;  %2623 = vmatmul.mubr.bf16.vlgmr.msra.gmra.mxu0 %v2190_v9  ;;  %v2121_v37 = vadd.f32 %v4531_v18, %v2068_v16  ;;  %v2125_v40 = vadd.f32 %v4531_v18, %v2072_v36  ;;  %v2069_v17 = vmul.f32 %v4534_v0, %v4368_v47 }
 0x214   : > { %2696 = vmatmul.mubr.bf16.vlgmr.msra.gmra.mxu1 %v2192_v31  ;;  %v2151_v1 = vmax.f32 %v2119_v61, 0.0  ;;  %v2155_v59 = vmax.f32 %v2123_v22, 0.0  ;;  %v2118_v45 = vadd.f32 %v4544_v28, %v2065_v20  ;;  %v2067_v57 = vmul.f32 %v4536_v27, %v4444_v54 }
 0x215   : > { %v2153_v15 = vmax.f32 %v2121_v37, 0.0  ;;  %v2157_v58 = vmax.f32 %v2125_v40, 0.0  ;;  %v2122_v19 = vadd.f32 %v4544_v28, %v2069_v17  ;;  %v2071_v29 = vmul.f32 %v4536_v27, %v4447_v33 }
 0x216   : > { %v2195_v48 = vpack.c.bf16 %v2155_v59, %v2151_v1  ;;  %v2150_v44 = vmax.f32 %v2118_v45, 0.0  ;;  %v2120_v63 = vadd.f32 %v4546_v25, %v2067_v57  ;;  %v2074_v47 = vmul.f32 %v4541_v23, %v4378_v3 }
 0x217   : > { %v2197_v2 = vpack.c.bf16 %v2157_v58, %v2153_v15  ;;  %v2154_v35 = vmax.f32 %v2122_v19, 0.0  ;;  %v2124_v50 = vadd.f32 %v4546_v25, %v2071_v29  ;;  %v2078_v54 = vmul.f32 %v4541_v23, %v4398_v32 }
 0x218   : > { %2632 = vmatprep.mubr.bf16.mxu0 %v2195_v48  ;;  %v2152_v5 = vmax.f32 %v2120_v63, 0.0  ;;  %v2127_v55 = vadd.f32 %v4529_v10, %v2074_v47  ;;  %v2076_v33 = vmul.f32 %v4538_v49, %v4490_v4  ;;  %v2080_v11 = vmul.f32 %v4538_v49, %v4497_v39 }
 0x219   : > { %2705 = vmatprep.mubr.bf16.mxu1 %v2197_v2  ;;  %v2194_v12 = vpack.c.bf16 %v2154_v35, %v2150_v44  ;;  %v2156_v3 = vmax.f32 %v2124_v50, 0.0  ;;  %v2131_v38 = vadd.f32 %v4529_v10, %v2078_v54  ;;  %v2073_v6 = vmul.f32 %v4534_v0, %v4388_v7 }
 0x21a   : > { %v2159_v26 = vmax.f32 %v2127_v55, 0.0  ;;  %v2129_v32 = vadd.f32 %v4531_v18, %v2076_v33  ;;  %v2133_v13 = vadd.f32 %v4531_v18, %v2080_v11  ;;  %v2077_v62 = vmul.f32 %v4534_v0, %v4405_v34 }
 0x21b   : > { %2633 = vmatmul.mubr.bf16.gmra.mxu0 %v2194_v12  ;;  %v2196_v4 = vpack.c.bf16 %v2156_v3, %v2152_v5  ;;  %v2163_v60 = vmax.f32 %v2131_v38, 0.0  ;;  %v2126_v39 = vadd.f32 %v4544_v28, %v2073_v6  ;;  %v2075_v8 = vmul.f32 %v4536_v27, %v4454_v24 }
 0x21c   : > { %v2161_v9 = vmax.f32 %v2129_v32, 0.0  ;;  %v2165_v16 = vmax.f32 %v2133_v13, 0.0  ;;  %v2130_v7 = vadd.f32 %v4544_v28, %v2077_v62  ;;  %v2079_v36 = vmul.f32 %v4536_v27, %v4459_v41 }
 0x21d   : > { %2706 = vmatmul.mubr.bf16.gmra.mxu1 %v2196_v4  ;;  %v2199_v31 = vpack.c.bf16 %v2163_v60, %v2159_v26  ;;  %v2158_v61 = vmax.f32 %v2126_v39, 0.0  ;;  %v2128_v34 = vadd.f32 %v4546_v25, %v2075_v8  ;;  %v2082_v22 = vmul.f32 %v4541_v23, %v4411_v43 }
 0x21e   : > { %v2201_v20 = vpack.c.bf16 %v2165_v16, %v2161_v9  ;;  %v2162_v37 = vmax.f32 %v2130_v7, 0.0  ;;  %v2132_v40 = vadd.f32 %v4546_v25, %v2079_v36  ;;  %v2086_v24 = vmul.f32 %v4541_v23, %v4423_v53 }
 0x21f   : > { %2642 = vmatprep.mubr.bf16.mxu0 %v2199_v31  ;;  %v2160_v17 = vmax.f32 %v2128_v34, 0.0  ;;  %v2135_v1 = vadd.f32 %v4529_v10, %v2082_v22  ;;  %v2084_v41 = vmul.f32 %v4538_v49, %v4504_v21  ;;  %v2141_v59 = vadd.f32 %v4531_v18, %v4550_v42 }
 0x220   : > { %2715 = vmatprep.mubr.bf16.mxu1 %v2201_v20  ;;  %v2198_v45 = vpack.c.bf16 %v2162_v37, %v2158_v61  ;;  %v2164_v43 = vmax.f32 %v2132_v40, 0.0  ;;  %v2139_v57 = vadd.f32 %v4529_v10, %v2086_v24  ;;  %v2081_v15 = vmul.f32 %v4534_v0, %v4417_v52 }
 0x221   : > { %v2167_v58 = vmax.f32 %v2135_v1, 0.0  ;;  %v2137_v53 = vadd.f32 %v4531_v18, %v2084_v41  ;;  %v2173_v23 = vmax.f32 %v2141_v59, 0.0  ;;  %v2085_v19 = vmul.f32 %v4534_v0, %v4429_v56 }
 0x222   : > { %v2171_v29 = vmax.f32 %v2139_v57, 0.0  ;;  %v2134_v21 = vadd.f32 %v4544_v28, %v2081_v15  ;;  %v2083_v49 = vmul.f32 %v4536_v27, %v4473_v51  ;;  %v2200_v42 = vpack.c.bf16 %v2164_v43, %v2160_v17 }
 0x223   : > { %2643 = vmatmul.mubr.bf16.gmra.mxu0 %v2198_v45  ;;  %v2169_v48 = vmax.f32 %v2137_v53, 0.0  ;;  %v2138_v10 = vadd.f32 %v4544_v28, %v2085_v19  ;;  %v2087_v52 = vmul.f32 %v4536_v27, %v4485_v14  ;;  %v634_v14 = vstv %s633_s7  ;;  %v632_v27 = vld [vmem:[%s4716_s5] sm:$0x3] }
 0x224   : > { %v2203_v18 = vpack.c.bf16 %v2171_v29, %v2167_v58  ;;  %v2136_v44 = vadd.f32 %v4546_v25, %v2083_v49  ;;  %v2166_v0 = vmax.f32 %v2134_v21, 0.0  ;;  %vm635_vm0 = vcmp.eq.s32.totalorder %v634_v14, 1 }
 0x225   : > { %2716 = vmatmul.mubr.bf16.gmra.mxu1 %v2200_v42  ;;  %v2205_v56 = vpack.c.bf16 %v2173_v23, %v2169_v48  ;;  %v2170_v63 = vmax.f32 %v2138_v10, 0.0  ;;  %v2140_v51 = vadd.f32 %v4546_v25, %v2087_v52  ;;  %v636_v50 = vsel %vm635_vm0, %v632_v27, 0.0 }
 0x226   : > { %2652 = vmatprep.mubr.bf16.mxu0 %v2203_v18  ;;  %v2168_v47 = vmax.f32 %v2136_v44, 0.0  ;;  %v4654_v54 = vrot.slane %v636_v50, %v4524_v46  ;;  %v4657_v11 = vrot.slane %v636_v50, %v4526_v30 }
 0x227   : > { %2725 = vmatprep.mubr.bf16.mxu1 %v2205_v56  ;;  %v2172_v2 = vmax.f32 %v2140_v51, 0.0  ;;  %v2202_v28 = vpack.c.bf16 %v2170_v63, %v2166_v0 }
 0x229   : > { %v2204_v35 = vpack.c.bf16 %v2172_v2, %v2168_v47 }
 0x22b   : > { %2653 = vmatmul.mubr.bf16.gmra.mxu0 %v2202_v28 }
 0x22d   : > { %2726 = vmatmul.mubr.bf16.gmra.mxu1 %v2204_v35 }
 0x2d3   : > { %v2624_v25 = vpop.f32.mrf.mxu0 }
 0x2d4   : > { %v2697_v5 = vpop.f32.mrf.mxu1 }
 0x2d5   : > { %v2698_v55 = vadd.f32 %v2697_v5, %v2624_v25  ;;  %v2626_v33 = vpop.f32.mrf.mxu0 }
 0x2d6   : > { %v2699_v12 = vpop.f32.mrf.mxu1 }
 0x2d7   : > { %v2736_v3 = vadd.f32 %v2698_v55, %v4654_v54  ;;  %v2700_v38 = vadd.f32 %v2699_v12, %v2626_v33  ;;  %v2628_v46 = vpop.f32.mrf.mxu0 }
 0x2d8   : > { %v2701_v6 = vpop.f32.mrf.mxu1 }
 0x2d9   : > { %2787 = vst [vmem:[%s4662_s19] sm:$0xff] %v2736_v3  ;;  %v2737_v26 = vadd.f32 %v2700_v38, %v4657_v11  ;;  %v2702_v30 = vadd.f32 %v2701_v6, %v2628_v46  ;;  %v2630_v32 = vpop.f32.mrf.mxu0 }
 0x2da   : > { %v2703_v13 = vpop.f32.mrf.mxu1 }
 0x2db   : > { %2788 = vst [vmem:[%s4662_s19 + $0x8] sm:$0xff] %v2737_v26  ;;  %v2738_v62 = vadd.f32 %v2702_v30, %v4654_v54  ;;  %v2704_v4 = vadd.f32 %v2703_v13, %v2630_v32  ;;  %v2634_v60 = vpop.f32.mrf.mxu0 }
 0x2dd   : > { %2789 = vst [vmem:[%s4662_s19 + $0x10] sm:$0xff] %v2738_v62  ;;  %v2739_v39 = vadd.f32 %v2704_v4, %v4657_v11  ;;  %v2707_v8 = vpop.f32.mrf.mxu1  ;;  %v2636_v9 = vpop.f32.mrf.mxu0 }
 0x2de   : > { %v2708_v16 = vadd.f32 %v2707_v8, %v2634_v60 }
 0x2df   : > { %2790 = vst [vmem:[%s4662_s19 + $0x18] sm:$0xff] %v2739_v39  ;;  %v2709_v7 = vpop.f32.mrf.mxu1  ;;  %v2638_v36 = vpop.f32.mrf.mxu0 }
 0x2e0   : > { %v2740_v31 = vadd.f32 %v2708_v16, %v4654_v54  ;;  %v2710_v61 = vadd.f32 %v2709_v7, %v2636_v9 }
 0x2e1   : > { %v2711_v34 = vpop.f32.mrf.mxu1  ;;  %v2640_v22 = vpop.f32.mrf.mxu0 }
 0x2e2   : > { %2791 = vst [vmem:[%s4662_s19 + $0x20] sm:$0xff] %v2740_v31  ;;  %v2741_v20 = vadd.f32 %v2710_v61, %v4657_v11  ;;  %v2712_v37 = vadd.f32 %v2711_v34, %v2638_v36 }
 0x2e3   : > { %v2713_v40 = vpop.f32.mrf.mxu1  ;;  %v2644_v24 = vpop.f32.mrf.mxu0 }
 0x2e4   : > { %2792 = vst [vmem:[%s4662_s19 + $0x28] sm:$0xff] %v2741_v20  ;;  %v2742_v17 = vadd.f32 %v2712_v37, %v4654_v54  ;;  %v2714_v1 = vadd.f32 %v2713_v40, %v2640_v22 }
 0x2e5   : > { %v2717_v41 = vpop.f32.mrf.mxu1  ;;  %v2646_v59 = vpop.f32.mrf.mxu0 }
 0x2e6   : > { %2793 = vst [vmem:[%s4662_s19 + $0x30] sm:$0xff] %v2742_v17  ;;  %v2743_v45 = vadd.f32 %v2714_v1, %v4657_v11  ;;  %v2718_v43 = vadd.f32 %v2717_v41, %v2644_v24 }
 0x2e7   : > { %v2719_v57 = vpop.f32.mrf.mxu1  ;;  %v2648_v15 = vpop.f32.mrf.mxu0 }
 0x2e8   : > { %2794 = vst [vmem:[%s4662_s19 + $0x38] sm:$0xff] %v2743_v45  ;;  %v2744_v58 = vadd.f32 %v2718_v43, %v4654_v54  ;;  %v2720_v53 = vadd.f32 %v2719_v57, %v2646_v59 }
 0x2e9   : > { %v2721_v23 = vpop.f32.mrf.mxu1  ;;  %v2650_v19 = vpop.f32.mrf.mxu0 }
 0x2ea   : > { %2795 = vst [vmem:[%s4662_s19 + $0x40] sm:$0xff] %v2744_v58  ;;  %v2745_v29 = vadd.f32 %v2720_v53, %v4657_v11  ;;  %v2722_v21 = vadd.f32 %v2721_v23, %v2648_v15 }
 0x2eb   : > { %v2723_v49 = vpop.f32.mrf.mxu1  ;;  %v2654_v42 = vpop.f32.mrf.mxu0 }
 0x2ec   : > { %2796 = vst [vmem:[%s4662_s19 + $0x48] sm:$0xff] %v2745_v29  ;;  %v2746_v48 = vadd.f32 %v2722_v21, %v4654_v54  ;;  %v2724_v10 = vadd.f32 %v2723_v49, %v2650_v19 }
 0x2ed   : > { %v2727_v52 = vpop.f32.mrf.mxu1  ;;  %v2656_v18 = vpop.f32.mrf.mxu0 }
 0x2ee   : > { %2797 = vst [vmem:[%s4662_s19 + $0x50] sm:$0xff] %v2746_v48  ;;  %v2747_v44 = vadd.f32 %v2724_v10, %v4657_v11  ;;  %v2728_v56 = vadd.f32 %v2727_v52, %v2654_v42 }
 0x2ef   : > { %v2729_v0 = vpop.f32.mrf.mxu1  ;;  %v2658_v63 = vpop.f32.mrf.mxu0 }
 0x2f0   : > { %2798 = vst [vmem:[%s4662_s19 + $0x58] sm:$0xff] %v2747_v44  ;;  %v2748_v51 = vadd.f32 %v2728_v56, %v4654_v54  ;;  %v2730_v47 = vadd.f32 %v2729_v0, %v2656_v18 }
 0x2f1   : > { %v2731_v2 = vpop.f32.mrf.mxu1  ;;  %v2660_v28 = vpop.f32.mrf.mxu0 }
 0x2f2   : > { %2799 = vst [vmem:[%s4662_s19 + $0x60] sm:$0xff] %v2748_v51  ;;  %v2749_v35 = vadd.f32 %v2730_v47, %v4657_v11  ;;  %v2732_v14 = vadd.f32 %v2731_v2, %v2658_v63 }
 0x2f3   : > { %v2733_v27 = vpop.f32.mrf.mxu1 }
 0x2f4   : > { %2800 = vst [vmem:[%s4662_s19 + $0x68] sm:$0xff] %v2749_v35  ;;  %v2750_v50 = vadd.f32 %v2732_v14, %v4654_v54  ;;  %v2734_v25 = vadd.f32 %v2733_v27, %v2660_v28 }
 0x2f6   : > { %2801 = vst [vmem:[%s4662_s19 + $0x70] sm:$0xff] %v2750_v50  ;;  %v2751_v5 = vadd.f32 %v2734_v25, %v4657_v11 }
 0x2f8   : > { %2802 = vst [vmem:[%s4662_s19 + $0x78] sm:$0xff] %v2751_v5 }
 0x2f9 PF: > { %s16_s25 = sadd.s32 1, %s3531_s25   ;;  %s4718_s21 = smov %s3519_s22 }
 0x2fa   : > { %p13_p13 = scmp.ge.s32.totalorder %s16_s25, 4   ;;  %s4719_s22 = smov %s3604_s29 }
 0x2fb   : > { %s4720_s23 = smov %s3527_s24  ;;  %s4721_s24 = smov %s4723_s26 }
 0x2fc   :  { %15 = sbr.rel (!%p13_p13) target bundleno = 3 (0x3), region = 119 }

</bundles_post_ra>
